<compile_context>
chip_gen: v6e
topology: v6e:2x2x1
jax: 0.10.0
libtpu: 0.0.40
codegen_flags: <defaults>
</compile_context>

<pallas_src>
import jax
import jax.numpy as jnp
from jax.experimental import pallas as pl
from jax.experimental.pallas import tpu as pltpu


def _round_up(x, m):
    return ((x + m - 1) // m) * m


def tower_kernel(x_ref, w1_ref, b1_ref, w2_ref, b2_ref, o_ref):
    # fc1: bf16 operands on the MXU, f32 accumulation.
    h = jnp.dot(x_ref[...], w1_ref[...], preferred_element_type=jnp.float32)
    h = h + b1_ref[...]                 # f32 bias add (broadcast (1, H) over rows)
    h = jnp.maximum(h, 0.0)             # ReLU in f32
    # Dropout(p=0.4): inference mode -> identity (training mode rejected in wrapper).
    # fc2: down-cast the activation only at the dot input; accumulate in f32.
    # NOTE: hidden=16 / out=4 heavily under-fill the MXU tile; the real fix is
    # fusing several towers so these dims reach >=128 (lane-dense output).
    y = jnp.dot(h.astype(w2_ref.dtype), w2_ref[...],
                preferred_element_type=jnp.float32)
    y = y + b2_ref[...]
    # Numerically stable sigmoid: exp and approx-reciprocal run on the EUP slot,
    # select/mul stay on the VPU.  No inf intermediates for large |y|.
    z = jnp.exp(-jnp.abs(y))
    inv = pl.reciprocal(1.0 + z, approx=True)
    o_ref[...] = jnp.where(y >= 0.0, inv, z * inv).astype(o_ref.dtype)


def tower_forward(x, w1, b1, w2, b2, *, block_b=512, training=False):
    """Inference-mode forward of the PyTorch Tower module.

    x : (B, input_size) float
    w1: (input_size, hidden), b1: (1, hidden)
    w2: (hidden, output),     b2: (1, output)
    """
    if training:
        # TODO(synk): training-mode dropout (pltpu.prng_random_bits mask +
        # 1/(1-p) scale) not implemented; this kernel matches Tower.eval() only.
        raise NotImplementedError("tower_forward implements inference (eval) mode only")

    B, in_f = x.shape
    hid = w1.shape[1]
    out_f = w2.shape[1]

    # Batch tile: >=512 rows when possible (amortizes per-step overhead, hits
    # ~85% of HBM roofline for streaming tiles), multiple of 8 for sublane tiling.
    TB = min(block_b, _round_up(B, 8))
    Bp = _round_up(B, TB)
    if Bp != B:
        x = jnp.pad(x, ((0, Bp - B), (0, 0)))

    # bf16 MXU operands (halves DMA bytes, native MXU path on v6e/v7x);
    # biases + elementwise math stay f32.
    x_c = x.astype(jnp.bfloat16)
    w1_c = w1.astype(jnp.bfloat16)
    w2_c = w2.astype(jnp.bfloat16)
    b1_c = b1.astype(jnp.float32)
    b2_c = b2.astype(jnp.float32)

    grid = (Bp // TB,)

    # VMEM budget: double-buffered x/out tiles + resident weights + f32 hidden
    # intermediate, with 4x headroom; capped well below v7x's 64 MiB VMEM.
    vmem_bytes = (
        2 * TB * in_f * 2                                   # x tile (bf16), 2 bufs
        + 2 * TB * out_f * 4                                # out tile (f32), 2 bufs
        + 2 * (in_f * hid * 2 + hid * 4 + hid * out_f * 2 + out_f * 4)  # weights
        + TB * hid * 4                                      # ReLU intermediate
    )
    vmem_limit = min(max(4 * vmem_bytes, 1 << 20), 64 << 20)

    out = pl.pallas_call(
        tower_kernel,
        out_shape=jax.ShapeDtypeStruct((Bp, out_f), jnp.float32),
        grid=grid,
        in_specs=[
            pl.BlockSpec((TB, in_f), lambda i: (i, 0)),    # stream batch tiles
            pl.BlockSpec((in_f, hid), lambda i: (0, 0)),   # weights VMEM-resident
            pl.BlockSpec((1, hid), lambda i: (0, 0)),
            pl.BlockSpec((hid, out_f), lambda i: (0, 0)),
            pl.BlockSpec((1, out_f), lambda i: (0, 0)),
        ],
        out_specs=pl.BlockSpec((TB, out_f), lambda i: (i, 0)),
        compiler_params=pltpu.CompilerParams(
            dimension_semantics=("parallel",),   # shard batch tiles across TCs (v7x)
            vmem_limit_bytes=vmem_limit,
        ),
    )(x_c, w1_c, b1_c, w2_c, b2_c)
    return out[:B]


def init_params(key, input_size, hidden_size, output_size):
    # Deterministic init mimicking nn.Linear's uniform(-1/sqrt(fan_in), 1/sqrt(fan_in)).
    k1, k2, k3, k4 = jax.random.split(key, 4)
    lim1 = 1.0 / jnp.sqrt(input_size)
    lim2 = 1.0 / jnp.sqrt(hidden_size)
    w1 = jax.random.uniform(k1, (input_size, hidden_size), jnp.float32, -lim1, lim1)
    b1 = jax.random.uniform(k2, (1, hidden_size), jnp.float32, -lim1, lim1)
    w2 = jax.random.uniform(k3, (hidden_size, output_size), jnp.float32, -lim2, lim2)
    b2 = jax.random.uniform(k4, (1, output_size), jnp.float32, -lim2, lim2)
    return w1, b1, w2, b2


if __name__ == "__main__":
    key = jax.random.PRNGKey(0)
    kx, kp = jax.random.split(key)

    # Module-default hidden=16; batch large enough to exercise the batch grid
    # (2 tiles of 512 rows) while remaining a small problem (~128 KiB of input).
    batch, input_size, hidden_size, output_size = 1024, 32, 16, 4
    x = jax.random.normal(kx, (batch, input_size), jnp.float32)
    w1, b1, w2, b2 = init_params(kp, input_size, hidden_size, output_size)

    out = tower_forward(x, w1, b1, w2, b2, block_b=512)
    out = jax.block_until_ready(out)

    # Reference in plain f32 JAX (eval-mode dropout == identity).  Tolerance is
    # loosened for the bf16 MXU operands + approximate EUP reciprocal.
    ref = jax.nn.sigmoid(jnp.maximum(x @ w1 + b1, 0.0) @ w2 + b2)
    assert out.shape == (batch, output_size)
    assert jnp.allclose(out, ref, atol=2e-2, rtol=2e-2)

    print("KERNEL_OK")
</pallas_src>

<mosaic_0001>
module attributes {stable_mosaic.version = 11 : i64} {
  func.func @tower_kernel(%arg0: i32, %arg1: memref<512x32xbf16, #tpu.memory_space<vmem>>, %arg2: memref<32x16xbf16, #tpu.memory_space<vmem>>, %arg3: memref<1x16xf32, #tpu.memory_space<vmem>>, %arg4: memref<16x4xbf16, #tpu.memory_space<vmem>>, %arg5: memref<1x4xf32, #tpu.memory_space<vmem>>, %arg6: memref<512x4xf32, #tpu.memory_space<vmem>>) attributes {dimension_semantics = [#tpu.dimension_semantics<parallel>], iteration_bounds = array<i64: 2>, scalar_prefetch = 0 : i64, scratch_operands = 0 : i64, tpu.core_type = #tpu.core_type<tc>, window_params = [{transform_indices = @transform_0, window_bounds = array<i64: 512, 32>}, {pipeline_mode = #tpu.pipeline_mode<synchronous>, transform_indices = @transform_1, window_bounds = array<i64: 32, 16>}, {pipeline_mode = #tpu.pipeline_mode<synchronous>, transform_indices = @transform_2, window_bounds = array<i64: 1, 16>}, {pipeline_mode = #tpu.pipeline_mode<synchronous>, transform_indices = @transform_3, window_bounds = array<i64: 16, 4>}, {pipeline_mode = #tpu.pipeline_mode<synchronous>, transform_indices = @transform_4, window_bounds = array<i64: 1, 4>}, {transform_indices = @transform_5, window_bounds = array<i64: 512, 4>}]} {
    %c0 = arith.constant 0 : index
    %c0_0 = arith.constant 0 : index
    %0 = vector.load %arg1[%c0, %c0_0] : memref<512x32xbf16, #tpu.memory_space<vmem>>, vector<512x32xbf16>
    %c0_1 = arith.constant 0 : index
    %c0_2 = arith.constant 0 : index
    %1 = vector.load %arg2[%c0_1, %c0_2] : memref<32x16xbf16, #tpu.memory_space<vmem>>, vector<32x16xbf16>
    %cst = arith.constant dense<0.000000e+00> : vector<512x16xf32>
    %2 = tpu.matmul %0, %1, %cst {dimension_numbers = #tpu.dot_dimension_numbers<[1], [0], [0], [1], [0, 0, 1, 1], [], []>} : vector<512x32xbf16>, vector<32x16xbf16>, vector<512x16xf32> -> vector<512x16xf32>
    %c0_3 = arith.constant 0 : index
    %c0_4 = arith.constant 0 : index
    %3 = vector.load %arg3[%c0_3, %c0_4] : memref<1x16xf32, #tpu.memory_space<vmem>>, vector<1x16xf32>
    %4 = vector.broadcast %3 : vector<1x16xf32> to vector<512x16xf32>
    %5 = arith.addf %2, %4 : vector<512x16xf32>
    %cst_5 = arith.constant 0.000000e+00 : f32
    %6 = vector.broadcast %cst_5 : f32 to vector<512x16xf32>
    %7 = arith.maximumf %5, %6 : vector<512x16xf32>
    %8 = arith.truncf %7 : vector<512x16xf32> to vector<512x16xbf16>
    %c0_6 = arith.constant 0 : index
    %c0_7 = arith.constant 0 : index
    %9 = vector.load %arg4[%c0_6, %c0_7] : memref<16x4xbf16, #tpu.memory_space<vmem>>, vector<16x4xbf16>
    %cst_8 = arith.constant dense<0.000000e+00> : vector<512x4xf32>
    %10 = tpu.matmul %8, %9, %cst_8 {dimension_numbers = #tpu.dot_dimension_numbers<[1], [0], [0], [1], [0, 0, 1, 1], [], []>} : vector<512x16xbf16>, vector<16x4xbf16>, vector<512x4xf32> -> vector<512x4xf32>
    %c0_9 = arith.constant 0 : index
    %c0_10 = arith.constant 0 : index
    %11 = vector.load %arg5[%c0_9, %c0_10] : memref<1x4xf32, #tpu.memory_space<vmem>>, vector<1x4xf32>
    %12 = vector.broadcast %11 : vector<1x4xf32> to vector<512x4xf32>
    %13 = arith.addf %10, %12 : vector<512x4xf32>
    %14 = math.absf %13 : vector<512x4xf32>
    %cst_11 = arith.constant 0.000000e+00 : f32
    %15 = vector.broadcast %cst_11 : f32 to vector<512x4xf32>
    %16 = arith.subf %15, %14 : vector<512x4xf32>
    %17 = math.exp %16 : vector<512x4xf32>
    %cst_12 = arith.constant 1.000000e+00 : f32
    %18 = vector.broadcast %cst_12 : f32 to vector<512x4xf32>
    %19 = arith.addf %18, %17 : vector<512x4xf32>
    %20 = tpu.reciprocal %19 {approx = true} : vector<512x4xf32> -> vector<512x4xf32>
    %cst_13 = arith.constant 0.000000e+00 : f32
    %21 = vector.broadcast %cst_13 : f32 to vector<512x4xf32>
    %22 = arith.cmpf oge, %13, %21 : vector<512x4xf32>
    %23 = arith.mulf %17, %20 : vector<512x4xf32>
    %24 = arith.select %22, %20, %23 : vector<512x4xi1>, vector<512x4xf32>
    %c0_14 = arith.constant 0 : index
    %c0_15 = arith.constant 0 : index
    %25 = vector.load %arg6[%c0_14, %c0_15] : memref<512x4xf32, #tpu.memory_space<vmem>>, vector<512x4xf32>
    tpu.vector_store %arg6[%c0_14, %c0_15], %24 {strides = array<i32>} : memref<512x4xf32, #tpu.memory_space<vmem>>, vector<512x4xf32>,
    return
  }
  func.func @transform_0(%arg0: i32) -> (i32, i32) {
    %c0_i32 = arith.constant 0 : i32
    %c0_i32_0 = arith.constant 0 : i32
    return %arg0, %c0_i32 : i32, i32
  }
  func.func @transform_1(%arg0: i32) -> (i32, i32) {
    %c0_i32 = arith.constant 0 : i32
    %c0_i32_0 = arith.constant 0 : i32
    %c0_i32_1 = arith.constant 0 : i32
    return %c0_i32, %c0_i32_0 : i32, i32
  }
  func.func @transform_2(%arg0: i32) -> (i32, i32) {
    %c0_i32 = arith.constant 0 : i32
    %c0_i32_0 = arith.constant 0 : i32
    %c0_i32_1 = arith.constant 0 : i32
    return %c0_i32, %c0_i32_0 : i32, i32
  }
  func.func @transform_3(%arg0: i32) -> (i32, i32) {
    %c0_i32 = arith.constant 0 : i32
    %c0_i32_0 = arith.constant 0 : i32
    %c0_i32_1 = arith.constant 0 : i32
    return %c0_i32, %c0_i32_0 : i32, i32
  }
  func.func @transform_4(%arg0: i32) -> (i32, i32) {
    %c0_i32 = arith.constant 0 : i32
    %c0_i32_0 = arith.constant 0 : i32
    %c0_i32_1 = arith.constant 0 : i32
    return %c0_i32, %c0_i32_0 : i32, i32
  }
  func.func @transform_5(%arg0: i32) -> (i32, i32) {
    %c0_i32 = arith.constant 0 : i32
    %c0_i32_0 = arith.constant 0 : i32
    return %arg0, %c0_i32 : i32, i32
  }
}

</mosaic_0001>

<bundles_post_ra>
// kernel: tpu_custom_call.1
= control target key start
LH: loop header
LB: loop body
LE: loop exit
PB: predicated region body
PF: predicated region fallthrough
CT: control target
= control target key end

     0   :  { %s2707_s18 = smov 0   ;;  %s3762_s0 = inlined_call_operand.vmem [shape: bf16[1024,32], index: 0, kind: input, shape index: {}]   ;;  %s3763_s1 = inlined_call_operand.vmem [shape: bf16[32,16], index: 1, kind: input, shape index: {}]   ;;  %s3764_s2 = inlined_call_operand.vmem [shape: f32[1,16], index: 2, kind: input, shape index: {}]   ;;  %s3765_s3 = inlined_call_operand.vmem [shape: bf16[16,4], index: 3, kind: input, shape index: {}]   ;;  %s3766_s4 = inlined_call_operand.vmem [shape: f32[1,4], index: 4, kind: input, shape index: {}]   ;;  %s3767_s5 = inlined_call_operand.vmem [shape: f32[1024,4], index: 5, kind: output, shape index: {}]  }
   0x1 LB: > { %s2056_s19 = sadd.s32 4294967295, %s2675_s18   ;;  %p2060_p0 = scmp.ge.s32.totalorder %s2675_s18, 1  ;;  %s2675_s18 = sphi %s2707_s18, %s15_s18  }
   0x2   : > { %p188_p1 = scmp.lt.s32.totalorder %s2675_s18, 3 }
   0x4   : > { %p189_p2 = pnand %p2060_p0, %p188_p1 }
   0x5   : > { %s2061_s22 = sshll.u32 (!%p189_p2), %s2056_s19, 6 }
   0x6   : > { %192 = sbr.rel (%p189_p2) target bundleno = 612 (0x264), region = 40  ;;  %p217_p3 = scmp.lt.s32.totalorder (!%p189_p2), %s2061_s22, 127 }
   0xb   : > { %v2377_v0 = vld [vmem:[%s3763_s1 + $0x8] sm:$0xff]   ;;  %v2378_v1 = vld [vmem:[%s3763_s1] sm:$0xff]   ;;  %s3769_s22 = smov (!%p217_p3, %s2061_s22), 127  ;;  %vm476_vm0 = vcmask 261120   ;;  %vm973_vm1 = vcmask 130048   ;;  %vm1935_vm2 = vcmask 31744  }
   0xc   : > { %2235 = vmatprep.subr.bf16.mxu0 %v2377_v0  ;;  %s2062_s25 = sshll.u32 %s3769_s22, 2  ;;  %v2411_v23 = vld [vmem:[%s3765_s3] sm:$0xff]   ;;  %s2064_s10 = sshll.u32 %s3769_s22, 3 }
   0xd   : > { %2236 = vmatpush3.bf16.msra.mxu0 %v2377_v0  ;;  %s2727_s28 = scalar_lea.vmem %s3762_s0, %s2062_s25  ;;  %2303 = vmatprep.subr.bf16.mxu1 %v2411_v23  ;;  %v2799_v37 = vld [vmem:[%s3764_s2] ss:$0 sm:$0xff]  ;;  %s3010_s13 = scalar_lea.vmem %s3767_s5, %s2064_s10 }
   0xe   : > { %2237 = vmatprep.subr.bf16.mxu0 %v2378_v1  ;;  %v2379_v2 = vld [vmem:[%s2727_s28] sm:$0xff]   ;;  %v2380_v3 = vld [vmem:[%s2727_s28 + $0x8] sm:$0xff]   ;;  %v2381_v4 = vld [vmem:[%s2727_s28 + $0x10] sm:$0xff]   ;;  %2304 = vmatpush3.bf16.msra.mxu1 %v2411_v23 }
   0xf   : > { %2239 = vmatprep.mubr.msk.bf16.mxu0 %vm476_vm0, %v2379_v2  ;;  %v2382_v5 = vld [vmem:[%s2727_s28 + $0x18] sm:$0xff]   ;;  %v2383_v6 = vld [vmem:[%s2727_s28 + $0x20] sm:$0xff]   ;;  %v2384_v7 = vld [vmem:[%s2727_s28 + $0x28] sm:$0xff]  }
  0x10   : > { %v2385_v8 = vld [vmem:[%s2727_s28 + $0x30] sm:$0xff]   ;;  %v2386_v9 = vld [vmem:[%s2727_s28 + $0x38] sm:$0xff]   ;;  %v2387_v10 = vld [vmem:[%s2727_s28 + $0x40] sm:$0xff]  }
  0x11   : > { %2238 = vmatpush3.bf16.msra.mxu0 %v2378_v1  ;;  %v2388_v11 = vld [vmem:[%s2727_s28 + $0x48] sm:$0xff]   ;;  %v2389_v12 = vld [vmem:[%s2727_s28 + $0x50] sm:$0xff]   ;;  %v2390_v13 = vld [vmem:[%s2727_s28 + $0x58] sm:$0xff]  }
  0x12   : > { %v2391_v14 = vld [vmem:[%s2727_s28 + $0x60] sm:$0xff]   ;;  %v2392_v15 = vld [vmem:[%s2727_s28 + $0x68] sm:$0xff]   ;;  %v2393_v16 = vld [vmem:[%s2727_s28 + $0x70] sm:$0xff]  }
  0x13   : > { %v2394_v17 = vld [vmem:[%s2727_s28 + $0x78] sm:$0xff]   ;;  %v2395_v18 = vld [vmem:[%s2727_s28 + $0x80] sm:$0xff]   ;;  %v2396_v19 = vld [vmem:[%s2727_s28 + $0x88] sm:$0xff]  }
  0x14   : > { %2240 = vmatmul.mubr.msk.bf16.vlgmr.msra.gmra.mxu0 %vm476_vm0, %v2380_v3  ;;  %v2397_v20 = vld [vmem:[%s2727_s28 + $0x90] sm:$0xff]   ;;  %v2398_v21 = vld [vmem:[%s2727_s28 + $0x98] sm:$0xff]   ;;  %v2399_v22 = vld [vmem:[%s2727_s28 + $0xa0] sm:$0xff]  }
  0x15   : > { %2243 = vmatprep.mubr.msk.bf16.mxu0 %vm476_vm0, %v2381_v4  ;;  %v2400_v24 = vld [vmem:[%s2727_s28 + $0xa8] sm:$0xff]   ;;  %v2401_v25 = vld [vmem:[%s2727_s28 + $0xb0] sm:$0xff]   ;;  %v2402_v26 = vld [vmem:[%s2727_s28 + $0xb8] sm:$0xff]  }
  0x16   : > { %v2403_v27 = vld [vmem:[%s2727_s28 + $0xc0] sm:$0xff]   ;;  %v2404_v28 = vld [vmem:[%s2727_s28 + $0xc8] sm:$0xff]   ;;  %v2405_v29 = vld [vmem:[%s2727_s28 + $0xd0] sm:$0xff]  }
  0x17   : > { %v2406_v30 = vld [vmem:[%s2727_s28 + $0xd8] sm:$0xff]   ;;  %v2407_v31 = vld [vmem:[%s2727_s28 + $0xe0] sm:$0xff]   ;;  %v2408_v32 = vld [vmem:[%s2727_s28 + $0xe8] sm:$0xff]  }
  0x18   : > { %v2409_v33 = vld [vmem:[%s2727_s28 + $0xf0] sm:$0xff]   ;;  %v2410_v34 = vld [vmem:[%s2727_s28 + $0xf8] sm:$0xff]  }
  0x1c   : > { %2244 = vmatmul.mubr.msk.bf16.gmra.mxu0 %vm476_vm0, %v2382_v5 }
  0x1d   : > { %2247 = vmatprep.mubr.msk.bf16.mxu0 %vm476_vm0, %v2383_v6 }
  0x24   : > { %2248 = vmatmul.mubr.msk.bf16.gmra.mxu0 %vm476_vm0, %v2384_v7 }
  0x25   : > { %2251 = vmatprep.mubr.msk.bf16.mxu0 %vm476_vm0, %v2385_v8 }
  0x2c   : > { %2252 = vmatmul.mubr.msk.bf16.gmra.mxu0 %vm476_vm0, %v2386_v9 }
  0x2d   : > { %2255 = vmatprep.mubr.msk.bf16.mxu0 %vm476_vm0, %v2387_v10 }
  0x34   : > { %2256 = vmatmul.mubr.msk.bf16.gmra.mxu0 %vm476_vm0, %v2388_v11 }
  0x35   : > { %2259 = vmatprep.mubr.msk.bf16.mxu0 %vm476_vm0, %v2389_v12 }
  0x3c   : > { %2260 = vmatmul.mubr.msk.bf16.gmra.mxu0 %vm476_vm0, %v2390_v13 }
  0x3d   : > { %2263 = vmatprep.mubr.msk.bf16.mxu0 %vm476_vm0, %v2391_v14 }
  0x44   : > { %2264 = vmatmul.mubr.msk.bf16.gmra.mxu0 %vm476_vm0, %v2392_v15 }
  0x45   : > { %2267 = vmatprep.mubr.msk.bf16.mxu0 %vm476_vm0, %v2393_v16 }
  0x4c   : > { %2268 = vmatmul.mubr.msk.bf16.gmra.mxu0 %vm476_vm0, %v2394_v17 }
  0x4d   : > { %2271 = vmatprep.mubr.msk.bf16.mxu0 %vm476_vm0, %v2395_v18 }
  0x54   : > { %2272 = vmatmul.mubr.msk.bf16.gmra.mxu0 %vm476_vm0, %v2396_v19 }
  0x55   : > { %2275 = vmatprep.mubr.msk.bf16.mxu0 %vm476_vm0, %v2397_v20 }
  0x5c   : > { %2276 = vmatmul.mubr.msk.bf16.gmra.mxu0 %vm476_vm0, %v2398_v21 }
  0x5d   : > { %2279 = vmatprep.mubr.msk.bf16.mxu0 %vm476_vm0, %v2399_v22 }
  0x64   : > { %2280 = vmatmul.mubr.msk.bf16.gmra.mxu0 %vm476_vm0, %v2400_v24 }
  0x65   : > { %2283 = vmatprep.mubr.msk.bf16.mxu0 %vm476_vm0, %v2401_v25 }
  0x6c   : > { %2284 = vmatmul.mubr.msk.bf16.gmra.mxu0 %vm476_vm0, %v2402_v26 }
  0x6d   : > { %2287 = vmatprep.mubr.msk.bf16.mxu0 %vm476_vm0, %v2403_v27 }
  0x74   : > { %2288 = vmatmul.mubr.msk.bf16.gmra.mxu0 %vm476_vm0, %v2404_v28 }
  0x75   : > { %2291 = vmatprep.mubr.msk.bf16.mxu0 %vm476_vm0, %v2405_v29 }
  0x7c   : > { %2292 = vmatmul.mubr.msk.bf16.gmra.mxu0 %vm476_vm0, %v2406_v30 }
  0x7d   : > { %2295 = vmatprep.mubr.msk.bf16.mxu0 %vm476_vm0, %v2407_v31 }
  0x84   : > { %2296 = vmatmul.mubr.msk.bf16.gmra.mxu0 %vm476_vm0, %v2408_v32 }
  0x85   : > { %2299 = vmatprep.mubr.msk.bf16.mxu0 %vm476_vm0, %v2409_v33 }
  0x8c   : > { %2300 = vmatmul.mubr.msk.bf16.gmra.mxu0 %vm476_vm0, %v2410_v34 }
  0xd4   : > { %v2241_v35 = vpop.f32.mrf.mxu0 }
  0xd5   : > { %v616_v41 = vadd.f32 %v2241_v35, %v2799_v37 }
  0xd6   : > { %v607_v36 = vpop.f32.mrf.mxu0 }
  0xd7   : > { %v608_v39 = vadd.f32 %v2799_v37, %v607_v36  ;;  %v864_v48 = vmax.f32 %v616_v41, 0.0 }
  0xd8   : > { %v2242_v38 = vpop.f32.mrf.mxu0 }
  0xd9   : > { %v619_v40 = vadd.f32 %v2242_v38, %v2799_v37  ;;  %v862_v46 = vmax.f32 %v608_v39, 0.0 }
  0xda   : > { %v610_v42 = vpop.f32.mrf.mxu0 }
  0xdb   : > { %v611_v43 = vadd.f32 %v2799_v37, %v610_v42  ;;  %v865_v44 = vmax.f32 %v619_v40, 0.0 }
  0xdc   : > { %v2245_v45 = vpop.f32.mrf.mxu0 }
  0xdd   : > { %v863_v47 = vmax.f32 %v611_v43, 0.0  ;;  %v927_v51 = vpack.c.bf16 %v865_v44, %v864_v48  ;;  %v632_v55 = vadd.f32 %v2245_v45, %v2799_v37 }
  0xde   : > { %v623_v49 = vpop.f32.mrf.mxu0 }
  0xdf   : > { %v926_v50 = vpack.c.bf16 %v863_v47, %v862_v46  ;;  %v624_v53 = vadd.f32 %v2799_v37, %v623_v49  ;;  %v868_v62 = vmax.f32 %v632_v55, 0.0 }
  0xe0   : > { %v2246_v52 = vpop.f32.mrf.mxu0 }
  0xe1   : > { %v635_v54 = vadd.f32 %v2246_v52, %v2799_v37  ;;  %2305 = vmatprep.mubr.msk.bf16.mxu1 %vm973_vm1, %v926_v50  ;;  %v866_v60 = vmax.f32 %v624_v53, 0.0 }
  0xe2   : > { %v626_v56 = vpop.f32.mrf.mxu0  ;;  %2306 = vmatmul.mubr.msk.bf16.vlgmr.msra.gmra.mxu1 %vm973_vm1, %v927_v51 }
  0xe3   : > { %v627_v57 = vadd.f32 %v2799_v37, %v626_v56  ;;  %v869_v58 = vmax.f32 %v635_v54, 0.0 }
  0xe4   : > { %v2249_v59 = vpop.f32.mrf.mxu0 }
  0xe5   : > { %v867_v61 = vmax.f32 %v627_v57, 0.0  ;;  %v929_v1 = vpack.c.bf16 %v869_v58, %v868_v62  ;;  %v648_v5 = vadd.f32 %v2249_v59, %v2799_v37 }
  0xe6   : > { %v639_v63 = vpop.f32.mrf.mxu0 }
  0xe7   : > { %v928_v0 = vpack.c.bf16 %v867_v61, %v866_v60  ;;  %v640_v3 = vadd.f32 %v2799_v37, %v639_v63  ;;  %v872_v12 = vmax.f32 %v648_v5, 0.0 }
  0xe8   : > { %v2250_v2 = vpop.f32.mrf.mxu0 }
  0xe9   : > { %v651_v4 = vadd.f32 %v2250_v2, %v2799_v37  ;;  %2309 = vmatprep.mubr.msk.bf16.mxu1 %vm973_vm1, %v928_v0  ;;  %v870_v10 = vmax.f32 %v640_v3, 0.0 }
  0xea   : > { %v642_v6 = vpop.f32.mrf.mxu0  ;;  %2310 = vmatmul.mubr.msk.bf16.gmra.mxu1 %vm973_vm1, %v929_v1 }
  0xeb   : > { %v643_v7 = vadd.f32 %v2799_v37, %v642_v6  ;;  %v873_v8 = vmax.f32 %v651_v4, 0.0 }
  0xec   : > { %v2253_v9 = vpop.f32.mrf.mxu0 }
  0xed   : > { %v871_v11 = vmax.f32 %v643_v7, 0.0  ;;  %v931_v15 = vpack.c.bf16 %v873_v8, %v872_v12  ;;  %v664_v19 = vadd.f32 %v2253_v9, %v2799_v37 }
  0xee   : > { %v655_v13 = vpop.f32.mrf.mxu0 }
  0xef   : > { %v930_v14 = vpack.c.bf16 %v871_v11, %v870_v10  ;;  %v656_v17 = vadd.f32 %v2799_v37, %v655_v13  ;;  %v876_v26 = vmax.f32 %v664_v19, 0.0 }
  0xf0   : > { %v2254_v16 = vpop.f32.mrf.mxu0 }
  0xf1   : > { %v667_v18 = vadd.f32 %v2254_v16, %v2799_v37  ;;  %2313 = vmatprep.mubr.msk.bf16.mxu1 %vm973_vm1, %v930_v14  ;;  %v874_v24 = vmax.f32 %v656_v17, 0.0 }
  0xf2   : > { %v658_v20 = vpop.f32.mrf.mxu0  ;;  %2314 = vmatmul.mubr.msk.bf16.gmra.mxu1 %vm973_vm1, %v931_v15 }
  0xf3   : > { %v659_v21 = vadd.f32 %v2799_v37, %v658_v20  ;;  %v877_v22 = vmax.f32 %v667_v18, 0.0 }
  0xf4   : > { %v2257_v23 = vpop.f32.mrf.mxu0 }
  0xf5   : > { %v875_v25 = vmax.f32 %v659_v21, 0.0  ;;  %v933_v29 = vpack.c.bf16 %v877_v22, %v876_v26  ;;  %v680_v33 = vadd.f32 %v2257_v23, %v2799_v37 }
  0xf6   : > { %v671_v27 = vpop.f32.mrf.mxu0 }
  0xf7   : > { %v932_v28 = vpack.c.bf16 %v875_v25, %v874_v24  ;;  %v672_v31 = vadd.f32 %v2799_v37, %v671_v27  ;;  %v880_v41 = vmax.f32 %v680_v33, 0.0 }
  0xf8   : > { %v2258_v30 = vpop.f32.mrf.mxu0 }
  0xf9   : > { %v683_v32 = vadd.f32 %v2258_v30, %v2799_v37  ;;  %2317 = vmatprep.mubr.msk.bf16.mxu1 %vm973_vm1, %v932_v28  ;;  %v878_v39 = vmax.f32 %v672_v31, 0.0 }
  0xfa   : > { %v674_v34 = vpop.f32.mrf.mxu0  ;;  %2318 = vmatmul.mubr.msk.bf16.gmra.mxu1 %vm973_vm1, %v933_v29 }
  0xfb   : > { %v675_v35 = vadd.f32 %v2799_v37, %v674_v34  ;;  %v881_v36 = vmax.f32 %v683_v32, 0.0 }
  0xfc   : > { %v2261_v38 = vpop.f32.mrf.mxu0 }
  0xfd   : > { %v879_v40 = vmax.f32 %v675_v35, 0.0  ;;  %v935_v44 = vpack.c.bf16 %v881_v36, %v880_v41  ;;  %v696_v48 = vadd.f32 %v2261_v38, %v2799_v37 }
  0xfe   : > { %v687_v42 = vpop.f32.mrf.mxu0 }
  0xff   : > { %v934_v43 = vpack.c.bf16 %v879_v40, %v878_v39  ;;  %v688_v46 = vadd.f32 %v2799_v37, %v687_v42  ;;  %v884_v55 = vmax.f32 %v696_v48, 0.0 }
 0x100   : > { %v2262_v45 = vpop.f32.mrf.mxu0 }
 0x101   : > { %v699_v47 = vadd.f32 %v2262_v45, %v2799_v37  ;;  %2321 = vmatprep.mubr.msk.bf16.mxu1 %vm973_vm1, %v934_v43  ;;  %v882_v53 = vmax.f32 %v688_v46, 0.0 }
 0x102   : > { %v690_v49 = vpop.f32.mrf.mxu0  ;;  %2322 = vmatmul.mubr.msk.bf16.gmra.mxu1 %vm973_vm1, %v935_v44 }
 0x103   : > { %v691_v50 = vadd.f32 %v2799_v37, %v690_v49  ;;  %v885_v51 = vmax.f32 %v699_v47, 0.0 }
 0x104   : > { %v2265_v52 = vpop.f32.mrf.mxu0 }
 0x105   : > { %v883_v54 = vmax.f32 %v691_v50, 0.0  ;;  %v937_v58 = vpack.c.bf16 %v885_v51, %v884_v55  ;;  %v712_v62 = vadd.f32 %v2265_v52, %v2799_v37 }
 0x106   : > { %v703_v56 = vpop.f32.mrf.mxu0 }
 0x107   : > { %v936_v57 = vpack.c.bf16 %v883_v54, %v882_v53  ;;  %v704_v60 = vadd.f32 %v2799_v37, %v703_v56  ;;  %v888_v5 = vmax.f32 %v712_v62, 0.0 }
 0x108   : > { %v2266_v59 = vpop.f32.mrf.mxu0 }
 0x109   : > { %v715_v61 = vadd.f32 %v2266_v59, %v2799_v37  ;;  %2325 = vmatprep.mubr.msk.bf16.mxu1 %vm973_vm1, %v936_v57  ;;  %v886_v3 = vmax.f32 %v704_v60, 0.0 }
 0x10a   : > { %v706_v63 = vpop.f32.mrf.mxu0  ;;  %2326 = vmatmul.mubr.msk.bf16.gmra.mxu1 %vm973_vm1, %v937_v58 }
 0x10b   : > { %v707_v0 = vadd.f32 %v2799_v37, %v706_v63  ;;  %v889_v1 = vmax.f32 %v715_v61, 0.0 }
 0x10c   : > { %v2269_v2 = vpop.f32.mrf.mxu0 }
 0x10d   : > { %v887_v4 = vmax.f32 %v707_v0, 0.0  ;;  %v939_v8 = vpack.c.bf16 %v889_v1, %v888_v5  ;;  %v728_v12 = vadd.f32 %v2269_v2, %v2799_v37 }
 0x10e   : > { %v719_v6 = vpop.f32.mrf.mxu0 }
 0x10f   : > { %v938_v7 = vpack.c.bf16 %v887_v4, %v886_v3  ;;  %v720_v10 = vadd.f32 %v2799_v37, %v719_v6  ;;  %v892_v19 = vmax.f32 %v728_v12, 0.0 }
 0x110   : > { %v2270_v9 = vpop.f32.mrf.mxu0 }
 0x111   : > { %v731_v11 = vadd.f32 %v2270_v9, %v2799_v37  ;;  %2329 = vmatprep.mubr.msk.bf16.mxu1 %vm973_vm1, %v938_v7  ;;  %v890_v17 = vmax.f32 %v720_v10, 0.0 }
 0x112   : > { %v722_v13 = vpop.f32.mrf.mxu0  ;;  %2330 = vmatmul.mubr.msk.bf16.gmra.mxu1 %vm973_vm1, %v939_v8 }
 0x113   : > { %v723_v14 = vadd.f32 %v2799_v37, %v722_v13  ;;  %v893_v15 = vmax.f32 %v731_v11, 0.0 }
 0x114   : > { %v2273_v16 = vpop.f32.mrf.mxu0 }
 0x115   : > { %v891_v18 = vmax.f32 %v723_v14, 0.0  ;;  %v941_v22 = vpack.c.bf16 %v893_v15, %v892_v19  ;;  %v744_v26 = vadd.f32 %v2273_v16, %v2799_v37 }
 0x116   : > { %v735_v20 = vpop.f32.mrf.mxu0 }
 0x117   : > { %v940_v21 = vpack.c.bf16 %v891_v18, %v890_v17  ;;  %v736_v24 = vadd.f32 %v2799_v37, %v735_v20  ;;  %v896_v33 = vmax.f32 %v744_v26, 0.0 }
 0x118   : > { %v2274_v23 = vpop.f32.mrf.mxu0 }
 0x119   : > { %v747_v25 = vadd.f32 %v2274_v23, %v2799_v37  ;;  %2333 = vmatprep.mubr.msk.bf16.mxu1 %vm973_vm1, %v940_v21  ;;  %v894_v31 = vmax.f32 %v736_v24, 0.0 }
 0x11a   : > { %v738_v27 = vpop.f32.mrf.mxu0  ;;  %2334 = vmatmul.mubr.msk.bf16.gmra.mxu1 %vm973_vm1, %v941_v22 }
 0x11b   : > { %v739_v28 = vadd.f32 %v2799_v37, %v738_v27  ;;  %v897_v29 = vmax.f32 %v747_v25, 0.0 }
 0x11c   : > { %v2277_v30 = vpop.f32.mrf.mxu0 }
 0x11d   : > { %v895_v32 = vmax.f32 %v739_v28, 0.0  ;;  %v943_v36 = vpack.c.bf16 %v897_v29, %v896_v33  ;;  %v760_v41 = vadd.f32 %v2277_v30, %v2799_v37 }
 0x11e   : > { %v751_v34 = vpop.f32.mrf.mxu0 }
 0x11f   : > { %v942_v35 = vpack.c.bf16 %v895_v32, %v894_v31  ;;  %v752_v39 = vadd.f32 %v2799_v37, %v751_v34  ;;  %v900_v48 = vmax.f32 %v760_v41, 0.0 }
 0x120   : > { %v2278_v38 = vpop.f32.mrf.mxu0 }
 0x121   : > { %v763_v40 = vadd.f32 %v2278_v38, %v2799_v37  ;;  %2337 = vmatprep.mubr.msk.bf16.mxu1 %vm973_vm1, %v942_v35  ;;  %v898_v46 = vmax.f32 %v752_v39, 0.0 }
 0x122   : > { %v754_v42 = vpop.f32.mrf.mxu0  ;;  %2338 = vmatmul.mubr.msk.bf16.gmra.mxu1 %vm973_vm1, %v943_v36 }
 0x123   : > { %v755_v43 = vadd.f32 %v2799_v37, %v754_v42  ;;  %v901_v44 = vmax.f32 %v763_v40, 0.0 }
 0x124   : > { %v2281_v45 = vpop.f32.mrf.mxu0 }
 0x125   : > { %v899_v47 = vmax.f32 %v755_v43, 0.0  ;;  %v945_v51 = vpack.c.bf16 %v901_v44, %v900_v48  ;;  %v776_v55 = vadd.f32 %v2281_v45, %v2799_v37 }
 0x126   : > { %v767_v49 = vpop.f32.mrf.mxu0 }
 0x127   : > { %v944_v50 = vpack.c.bf16 %v899_v47, %v898_v46  ;;  %v768_v53 = vadd.f32 %v2799_v37, %v767_v49  ;;  %v904_v62 = vmax.f32 %v776_v55, 0.0 }
 0x128   : > { %v2282_v52 = vpop.f32.mrf.mxu0 }
 0x129   : > { %v779_v54 = vadd.f32 %v2282_v52, %v2799_v37  ;;  %2341 = vmatprep.mubr.msk.bf16.mxu1 %vm973_vm1, %v944_v50  ;;  %v902_v60 = vmax.f32 %v768_v53, 0.0 }
 0x12a   : > { %v770_v56 = vpop.f32.mrf.mxu0  ;;  %2342 = vmatmul.mubr.msk.bf16.gmra.mxu1 %vm973_vm1, %v945_v51 }
 0x12b   : > { %v771_v57 = vadd.f32 %v2799_v37, %v770_v56  ;;  %v905_v58 = vmax.f32 %v779_v54, 0.0 }
 0x12c   : > { %v2285_v59 = vpop.f32.mrf.mxu0 }
 0x12d   : > { %v903_v61 = vmax.f32 %v771_v57, 0.0  ;;  %v947_v1 = vpack.c.bf16 %v905_v58, %v904_v62  ;;  %v792_v5 = vadd.f32 %v2285_v59, %v2799_v37 }
 0x12e   : > { %v783_v63 = vpop.f32.mrf.mxu0 }
 0x12f   : > { %v946_v0 = vpack.c.bf16 %v903_v61, %v902_v60  ;;  %v784_v3 = vadd.f32 %v2799_v37, %v783_v63  ;;  %v908_v12 = vmax.f32 %v792_v5, 0.0 }
 0x130   : > { %v2286_v2 = vpop.f32.mrf.mxu0 }
 0x131   : > { %v795_v4 = vadd.f32 %v2286_v2, %v2799_v37  ;;  %2345 = vmatprep.mubr.msk.bf16.mxu1 %vm973_vm1, %v946_v0  ;;  %v906_v10 = vmax.f32 %v784_v3, 0.0 }
 0x132   : > { %v786_v6 = vpop.f32.mrf.mxu0  ;;  %2346 = vmatmul.mubr.msk.bf16.gmra.mxu1 %vm973_vm1, %v947_v1 }
 0x133   : > { %v787_v7 = vadd.f32 %v2799_v37, %v786_v6  ;;  %v909_v8 = vmax.f32 %v795_v4, 0.0 }
 0x134   : > { %v2289_v9 = vpop.f32.mrf.mxu0 }
 0x135   : > { %v907_v11 = vmax.f32 %v787_v7, 0.0  ;;  %v949_v15 = vpack.c.bf16 %v909_v8, %v908_v12  ;;  %v808_v19 = vadd.f32 %v2289_v9, %v2799_v37  ;;  %v2900_v7 = vld [vmem:[%s3766_s4] ss:$0 sm:$0xff] }
 0x136   : > { %v799_v13 = vpop.f32.mrf.mxu0 }
 0x137   : > { %v948_v14 = vpack.c.bf16 %v907_v11, %v906_v10  ;;  %v800_v17 = vadd.f32 %v2799_v37, %v799_v13  ;;  %v912_v26 = vmax.f32 %v808_v19, 0.0 }
 0x138   : > { %v2290_v16 = vpop.f32.mrf.mxu0 }
 0x139   : > { %v811_v18 = vadd.f32 %v2290_v16, %v2799_v37  ;;  %2349 = vmatprep.mubr.msk.bf16.mxu1 %vm973_vm1, %v948_v14  ;;  %v910_v24 = vmax.f32 %v800_v17, 0.0 }
 0x13a   : > { %v802_v20 = vpop.f32.mrf.mxu0  ;;  %2350 = vmatmul.mubr.msk.bf16.gmra.mxu1 %vm973_vm1, %v949_v15 }
 0x13b   : > { %v803_v21 = vadd.f32 %v2799_v37, %v802_v20  ;;  %v913_v22 = vmax.f32 %v811_v18, 0.0 }
 0x13c   : > { %v2293_v23 = vpop.f32.mrf.mxu0 }
 0x13d   : > { %v911_v25 = vmax.f32 %v803_v21, 0.0  ;;  %v951_v29 = vpack.c.bf16 %v913_v22, %v912_v26  ;;  %v824_v33 = vadd.f32 %v2293_v23, %v2799_v37 }
 0x13e   : > { %v815_v27 = vpop.f32.mrf.mxu0 }
 0x13f   : > { %v950_v28 = vpack.c.bf16 %v911_v25, %v910_v24  ;;  %v816_v31 = vadd.f32 %v2799_v37, %v815_v27  ;;  %v916_v41 = vmax.f32 %v824_v33, 0.0 }
 0x140   : > { %v2294_v30 = vpop.f32.mrf.mxu0 }
 0x141   : > { %v827_v32 = vadd.f32 %v2294_v30, %v2799_v37  ;;  %2353 = vmatprep.mubr.msk.bf16.mxu1 %vm973_vm1, %v950_v28  ;;  %v914_v39 = vmax.f32 %v816_v31, 0.0 }
 0x142   : > { %v818_v34 = vpop.f32.mrf.mxu0  ;;  %2354 = vmatmul.mubr.msk.bf16.gmra.mxu1 %vm973_vm1, %v951_v29 }
 0x143   : > { %v819_v35 = vadd.f32 %v2799_v37, %v818_v34  ;;  %v917_v36 = vmax.f32 %v827_v32, 0.0 }
 0x144   : > { %v2297_v38 = vpop.f32.mrf.mxu0 }
 0x145   : > { %v915_v40 = vmax.f32 %v819_v35, 0.0  ;;  %v953_v44 = vpack.c.bf16 %v917_v36, %v916_v41  ;;  %v840_v48 = vadd.f32 %v2297_v38, %v2799_v37 }
 0x146   : > { %v831_v42 = vpop.f32.mrf.mxu0 }
 0x147   : > { %v952_v43 = vpack.c.bf16 %v915_v40, %v914_v39  ;;  %v832_v46 = vadd.f32 %v2799_v37, %v831_v42  ;;  %v920_v55 = vmax.f32 %v840_v48, 0.0 }
 0x148   : > { %v2298_v45 = vpop.f32.mrf.mxu0 }
 0x149   : > { %v843_v47 = vadd.f32 %v2298_v45, %v2799_v37  ;;  %2357 = vmatprep.mubr.msk.bf16.mxu1 %vm973_vm1, %v952_v43  ;;  %v918_v53 = vmax.f32 %v832_v46, 0.0 }
 0x14a   : > { %v834_v49 = vpop.f32.mrf.mxu0  ;;  %2358 = vmatmul.mubr.msk.bf16.gmra.mxu1 %vm973_vm1, %v953_v44 }
 0x14b   : > { %v835_v50 = vadd.f32 %v2799_v37, %v834_v49  ;;  %v921_v51 = vmax.f32 %v843_v47, 0.0 }
 0x14c   : > { %v2301_v52 = vpop.f32.mrf.mxu0 }
 0x14d   : > { %v919_v54 = vmax.f32 %v835_v50, 0.0  ;;  %v955_v58 = vpack.c.bf16 %v921_v51, %v920_v55  ;;  %v856_v62 = vadd.f32 %v2301_v52, %v2799_v37 }
 0x14e   : > { %v847_v56 = vpop.f32.mrf.mxu0 }
 0x14f   : > { %v954_v57 = vpack.c.bf16 %v919_v54, %v918_v53  ;;  %v848_v60 = vadd.f32 %v2799_v37, %v847_v56  ;;  %v924_v4 = vmax.f32 %v856_v62, 0.0 }
 0x150   : > { %v2302_v59 = vpop.f32.mrf.mxu0 }
 0x151   : > { %v859_v61 = vadd.f32 %v2302_v59, %v2799_v37  ;;  %2361 = vmatprep.mubr.msk.bf16.mxu1 %vm973_vm1, %v954_v57  ;;  %v922_v2 = vmax.f32 %v848_v60, 0.0 }
 0x152   : > { %v850_v63 = vpop.f32.mrf.mxu0  ;;  %2362 = vmatmul.mubr.msk.bf16.gmra.mxu1 %vm973_vm1, %v955_v58 }
 0x153   : > { %v851_v0 = vadd.f32 %v2799_v37, %v850_v63  ;;  %v925_v1 = vmax.f32 %v859_v61, 0.0 }
 0x155   : > { %v923_v3 = vmax.f32 %v851_v0, 0.0  ;;  %v957_v6 = vpack.c.bf16 %v925_v1, %v924_v4 }
 0x157   : > { %v956_v5 = vpack.c.bf16 %v923_v3, %v922_v2 }
 0x159   : > { %2365 = vmatprep.mubr.msk.bf16.mxu1 %vm973_vm1, %v956_v5 }
 0x15a   : > { %2366 = vmatmul.mubr.msk.bf16.gmra.mxu1 %vm973_vm1, %v957_v6 }
 0x1a2   : > { %v2307_v8 = vpop.f32.mrf.mxu1 }
 0x1a3   : > { %v2903_v9 = vadd.f32 %v2307_v8, %v2900_v7 }
 0x1a4   : > { %v1104_v37 = vpop.f32.mrf.mxu1 }
 0x1a5   : > { %v1361_v10 = vand.u32 2147483647, %v2903_v9  ;;  %v2907_v11 = vadd.f32 %v2900_v7, %v1104_v37  ;;  %vm1745_vm3 = vcmp.ge.f32.partialorder %v2903_v9, 0.0 }
 0x1a6   : > { %v2308_v12 = vpop.f32.mrf.mxu1 }
 0x1a7   : > { %v1425_v13 = vsub.f32 0.0, %v1361_v10  ;;  %v1359_v14 = vand.u32 2147483647, %v2907_v11  ;;  %v2911_v15 = vadd.f32 %v2308_v12, %v2900_v7  ;;  %vm1743_vm4 = vcmp.ge.f32.partialorder %v2907_v11, 0.0 }
 0x1a8   : > { %v1107_v16 = vpop.f32.mrf.mxu1 }
 0x1a9   : > { %v1491_v17 = vmul.f32 1.442695, %v1425_v13  ;;  %v1423_v18 = vsub.f32 0.0, %v1359_v14  ;;  %v1362_v19 = vand.u32 2147483647, %v2911_v15  ;;  %v2915_v20 = vadd.f32 %v2900_v7, %v1107_v16 }
 0x1aa   : > { %v2311_v21 = vpop.f32.mrf.mxu1  ;;  %vm1746_vm5 = vcmp.ge.f32.partialorder %v2911_v15, 0.0 }
 0x1ab   : > { %2412 = vpow2.f32 %v1491_v17  ;;  %v1487_v22 = vmul.f32 1.442695, %v1423_v18  ;;  %v1426_v23 = vsub.f32 0.0, %v1362_v19  ;;  %v2918_v24 = vadd.f32 %v2311_v21, %v2900_v7 }
 0x1ac   : > { %v1360_v25 = vand.u32 2147483647, %v2915_v20  ;;  %v1120_v26 = vpop.f32.mrf.mxu1  ;;  %vm1744_vm6 = vcmp.ge.f32.partialorder %v2915_v20, 0.0 }
 0x1ad   : > { %2414 = vpow2.f32 %v1487_v22  ;;  %v1493_v27 = vmul.f32 1.442695, %v1426_v23  ;;  %v1365_v28 = vand.u32 2147483647, %v2918_v24  ;;  %v2923_v30 = vadd.f32 %v2900_v7, %v1120_v26 }
 0x1ae   : > { %v1424_v29 = vsub.f32 0.0, %v1360_v25  ;;  %v2312_v31 = vpop.f32.mrf.mxu1  ;;  %vm1749_vm7 = vcmp.ge.f32.partialorder %v2918_v24, 0.0 }
 0x1af   : > { %2416 = vpow2.f32 %v1493_v27  ;;  %v1429_v32 = vsub.f32 0.0, %v1365_v28  ;;  %v2926_v33 = vadd.f32 %v2312_v31, %v2900_v7  ;;  %v1363_v35 = vand.u32 2147483647, %v2923_v30 }
 0x1b0   : > { %v1489_v34 = vmul.f32 1.442695, %v1424_v29  ;;  %v1123_v36 = vpop.f32.mrf.mxu1  ;;  %vm1747_vm8 = vcmp.ge.f32.partialorder %v2923_v30, 0.0 }
 0x1b1   : > { %v1499_v38 = vmul.f32 1.442695, %v1429_v32  ;;  %v1366_v39 = vand.u32 2147483647, %v2926_v33  ;;  %v2931_v40 = vadd.f32 %v2900_v7, %v1123_v36  ;;  %v1427_v41 = vsub.f32 0.0, %v1363_v35 }
 0x1b2   : > { %2418 = vpow2.f32 %v1489_v34  ;;  %v2315_v42 = vpop.f32.mrf.mxu1  ;;  %vm1750_vm9 = vcmp.ge.f32.partialorder %v2926_v33, 0.0 }
 0x1b3   : > { %2420 = vpow2.f32 %v1499_v38  ;;  %v1430_v43 = vsub.f32 0.0, %v1366_v39  ;;  %v1364_v44 = vand.u32 2147483647, %v2931_v40  ;;  %v1495_v45 = vmul.f32 1.442695, %v1427_v41 }
 0x1b4   : > { %v2935_v46 = vadd.f32 %v2315_v42, %v2900_v7  ;;  %v1136_v47 = vpop.f32.mrf.mxu1  ;;  %vm1748_vm10 = vcmp.ge.f32.partialorder %v2931_v40, 0.0 }
 0x1b5   : > { %v1501_v48 = vmul.f32 1.442695, %v1430_v43  ;;  %v1428_v49 = vsub.f32 0.0, %v1364_v44  ;;  %v2938_v50 = vadd.f32 %v2900_v7, %v1136_v47  ;;  %2422 = vpow2.f32 %v1495_v45 }
 0x1b6   : > { %v1369_v51 = vand.u32 2147483647, %v2935_v46  ;;  %v2316_v52 = vpop.f32.mrf.mxu1  ;;  %vm1753_vm11 = vcmp.ge.f32.partialorder %v2935_v46, 0.0 }
 0x1b7   : > { %2424 = vpow2.f32 %v1501_v48  ;;  %v1497_v53 = vmul.f32 1.442695, %v1428_v49  ;;  %v1367_v54 = vand.u32 2147483647, %v2938_v50  ;;  %v2945_v57 = vadd.f32 %v2316_v52, %v2900_v7 }
 0x1b8   : > { %v2942_v55 = vpop.eup %2412  ;;  %v1433_v56 = vsub.f32 0.0, %v1369_v51  ;;  %v1139_v58 = vpop.f32.mrf.mxu1  ;;  %vm1751_vm12 = vcmp.ge.f32.partialorder %v2938_v50, 0.0 }
 0x1b9   : > { %v1617_v59 = vadd.f32 1.0, %v2942_v55  ;;  %2426 = vpow2.f32 %v1497_v53  ;;  %v1431_v60 = vsub.f32 0.0, %v1367_v54  ;;  %v2949_v61 = vadd.f32 %v2900_v7, %v1139_v58 }
 0x1ba   : > { %v2951_v62 = vpop.eup %2414  ;;  %v1507_v63 = vmul.f32 1.442695, %v1433_v56  ;;  %v1370_v0 = vand.u32 2147483647, %v2945_v57  ;;  %v2319_v1 = vpop.f32.mrf.mxu1  ;;  %vm1754_vm13 = vcmp.ge.f32.partialorder %v2945_v57, 0.0 }
 0x1bb   : > { %2428 = vrcp.f32 %v1617_v59  ;;  %v1615_v2 = vadd.f32 1.0, %v2951_v62  ;;  %v1503_v3 = vmul.f32 1.442695, %v1431_v60  ;;  %v1368_v4 = vand.u32 2147483647, %v2949_v61 }
 0x1bc   : > { %v2956_v5 = vpop.eup %2416  ;;  %2430 = vpow2.f32 %v1507_v63  ;;  %v1434_v6 = vsub.f32 0.0, %v1370_v0  ;;  %v2959_v8 = vadd.f32 %v2319_v1, %v2900_v7  ;;  %v1152_v37 = vpop.f32.mrf.mxu1  ;;  %vm1752_vm14 = vcmp.ge.f32.partialorder %v2949_v61, 0.0 }
 0x1bd   : > { %2432 = vrcp.f32 %v1615_v2  ;;  %v1618_v10 = vadd.f32 1.0, %v2956_v5  ;;  %v1432_v12 = vsub.f32 0.0, %v1368_v4  ;;  %v2963_v13 = vadd.f32 %v2900_v7, %v1152_v37 }
 0x1be   : > { %2434 = vpow2.f32 %v1503_v3  ;;  %v1509_v14 = vmul.f32 1.442695, %v1434_v6  ;;  %v1373_v16 = vand.u32 2147483647, %v2959_v8  ;;  %v2320_v17 = vpop.f32.mrf.mxu1  ;;  %vm1757_vm15 = vcmp.ge.f32.partialorder %v2959_v8, 0.0 }
 0x1bf   : > { %v2966_v18 = vpop.eup %2418  ;;  %2436 = vrcp.f32 %v1618_v10  ;;  %v1505_v19 = vmul.f32 1.442695, %v1432_v12  ;;  %v1371_v21 = vand.u32 2147483647, %v2963_v13  ;;  %v2973_v26 = vadd.f32 %v2320_v17, %v2900_v7 }
 0x1c0   : > { %v2969_v22 = vpop.eup %2420  ;;  %v1616_v23 = vadd.f32 1.0, %v2966_v18  ;;  %2438 = vpow2.f32 %v1509_v14  ;;  %v1437_v25 = vsub.f32 0.0, %v1373_v16  ;;  %v1155_v27 = vpop.f32.mrf.mxu1  ;;  %vm1755_vm0 = vcmp.ge.f32.partialorder %v2963_v13, 0.0 }
 0x1c1   : > { %v1621_v28 = vadd.f32 1.0, %v2969_v22  ;;  %2440 = vpow2.f32 %v1505_v19  ;;  %v1435_v29 = vsub.f32 0.0, %v1371_v21  ;;  %v2977_v31 = vadd.f32 %v2900_v7, %v1155_v27 }
 0x1c2   : > { %2442 = vrcp.f32 %v1616_v23  ;;  %v1515_v32 = vmul.f32 1.442695, %v1437_v25  ;;  %v1374_v34 = vand.u32 2147483647, %v2973_v26  ;;  %v2323_v35 = vpop.f32.mrf.mxu1  ;;  %v2980_v36 = vpop.eup %2422  ;;  %vm1758_vm1 = vcmp.ge.f32.partialorder %v2973_v26, 0.0 }
 0x1c3   : > { %2444 = vrcp.f32 %v1621_v28  ;;  %v1511_v38 = vmul.f32 1.442695, %v1435_v29  ;;  %v1372_v39 = vand.u32 2147483647, %v2977_v31  ;;  %v1619_v42 = vadd.f32 1.0, %v2980_v36 }
 0x1c4   : > { %v2984_v41 = vpop.eup %2424  ;;  %2446 = vpow2.f32 %v1515_v32  ;;  %v1438_v43 = vsub.f32 0.0, %v1374_v34  ;;  %v2988_v44 = vadd.f32 %v2323_v35, %v2900_v7  ;;  %v1168_v45 = vpop.f32.mrf.mxu1 }
 0x1c5   : > { %v1622_v47 = vadd.f32 1.0, %v2984_v41  ;;  %2448 = vpow2.f32 %v1511_v38  ;;  %v1436_v48 = vsub.f32 0.0, %v1372_v39  ;;  %v2992_v49 = vadd.f32 %v2900_v7, %v1168_v45 }
 0x1c6   : > { %v2994_v51 = vpop.eup %2426  ;;  %2450 = vrcp.f32 %v1619_v42  ;;  %v1517_v52 = vmul.f32 1.442695, %v1438_v43  ;;  %v1377_v53 = vand.u32 2147483647, %v2988_v44  ;;  %v2324_v54 = vpop.f32.mrf.mxu1 }
 0x1c7   : > { %2452 = vrcp.f32 %v1622_v47  ;;  %v1620_v56 = vadd.f32 1.0, %v2994_v51  ;;  %v1513_v58 = vmul.f32 1.442695, %v1436_v48  ;;  %v1375_v59 = vand.u32 2147483647, %v2992_v49 }
 0x1c8   : > { %v2429_v60 = vpop.eup %2428  ;;  %2454 = vpow2.f32 %v1517_v52  ;;  %v1441_v63 = vsub.f32 0.0, %v1377_v53  ;;  %v3003_v0 = vadd.f32 %v2324_v54, %v2900_v7  ;;  %v1171_v1 = vpop.f32.mrf.mxu1 }
 0x1c9   : > { %v3005_v2 = vpop.eup %2430  ;;  %v1809_v3 = vmul.f32 %v2429_v60, %v2942_v55  ;;  %2456 = vrcp.f32 %v1620_v56  ;;  %v1439_v4 = vsub.f32 0.0, %v1375_v59  ;;  %v3015_v6 = vadd.f32 %v2900_v7, %v1171_v1 }
 0x1ca   : > { %v2433_v37 = vpop.eup %2432  ;;  %v1625_v10 = vadd.f32 1.0, %v3005_v2  ;;  %2458 = vpow2.f32 %v1513_v58  ;;  %v1523_v12 = vmul.f32 1.442695, %v1441_v63  ;;  %v1378_v14 = vand.u32 2147483647, %v3003_v0  ;;  %v2327_v16 = vpop.f32.mrf.mxu1 }
 0x1cb   : > { %v3019_v17 = vpop.eup %2434  ;;  %v1873_v55 = vsel %vm1745_vm3, %v2429_v60, %v1809_v3  ;;  %v1807_v19 = vmul.f32 %v2433_v37, %v2951_v62  ;;  %v1519_v21 = vmul.f32 1.442695, %v1439_v4  ;;  %v1376_v28 = vand.u32 2147483647, %v3015_v6 }
 0x1cc   : > { %v2437_v23 = vpop.eup %2436  ;;  %1938 = vst.msk [vmem:[%s3010_s13 + $0x10] sm:$0xff] %vm1935_vm2, %v1873_v55  ;;  %2460 = vrcp.f32 %v1625_v10  ;;  %v1623_v25 = vadd.f32 1.0, %v3019_v17  ;;  %v1442_v27 = vsub.f32 0.0, %v1378_v14  ;;  %v1184_v29 = vpop.f32.mrf.mxu1  ;;  %v3045_v45 = vadd.f32 %v2327_v16, %v2900_v7 }
 0x1cd   : > { %v3029_v32 = vpop.eup %2438  ;;  %v1871_v9 = vsel %vm1743_vm4, %v2433_v37, %v1807_v19  ;;  %v1810_v62 = vmul.f32 %v2437_v23, %v2956_v5  ;;  %2462 = vpow2.f32 %v1523_v12  ;;  %v1440_v39 = vsub.f32 0.0, %v1376_v28 }
 0x1ce   : > { %v3035_v34 = vpop.eup %2440  ;;  %1936 = vst.msk [vmem:[%s3010_s13] sm:$0xff] %vm1935_vm2, %v1871_v9  ;;  %2464 = vrcp.f32 %v1623_v25  ;;  %v1626_v35 = vadd.f32 1.0, %v3029_v32  ;;  %v1525_v38 = vmul.f32 1.442695, %v1442_v27  ;;  %v2328_v42 = vpop.f32.mrf.mxu1  ;;  %v3051_v53 = vadd.f32 %v2900_v7, %v1184_v29 }
 0x1cf   : > { %v2443_v11 = vpop.eup %2442  ;;  %v1874_v5 = vsel %vm1746_vm5, %v2437_v23, %v1810_v62  ;;  %v1624_v43 = vadd.f32 1.0, %v3035_v34  ;;  %2466 = vpow2.f32 %v1519_v21  ;;  %v1521_v52 = vmul.f32 1.442695, %v1440_v39 }
 0x1d0   : > { %v2445_v47 = vpop.eup %2444  ;;  %1939 = vst.msk [vmem:[%s3010_s13 + $0x18] sm:$0xff] %vm1935_vm2, %v1874_v5  ;;  %v1808_v48 = vmul.f32 %v2443_v11, %v2966_v18  ;;  %2468 = vrcp.f32 %v1626_v35  ;;  %v1187_v54 = vpop.f32.mrf.mxu1  ;;  %v1381_v58 = vand.u32 2147483647, %v3045_v45  ;;  %v1379_v63 = vand.u32 2147483647, %v3051_v53 }
 0x1d1   : > { %v3053_v15 = vpop.eup %2446  ;;  %v1813_v56 = vmul.f32 %v2445_v47, %v2969_v22  ;;  %2470 = vrcp.f32 %v1624_v43  ;;  %v3077_v19 = vadd.f32 %v2328_v42, %v2900_v7  ;;  %v3083_v27 = vadd.f32 %v2900_v7, %v1187_v54 }
 0x1d2   : > { %v3058_v59 = vpop.eup %2448  ;;  %v1872_v18 = vsel %vm1744_vm6, %v2443_v11, %v1808_v48  ;;  %v1629_v60 = vadd.f32 1.0, %v3053_v15  ;;  %2472 = vpow2.f32 %v1525_v38  ;;  %v2331_v1 = vpop.f32.mrf.mxu1  ;;  %v1445_v37 = vsub.f32 0.0, %v1381_v58 }
 0x1d3   : > { %v2451_v3 = vpop.eup %2450  ;;  %1937 = vst.msk [vmem:[%s3010_s13 + $0x8] sm:$0xff] %vm1935_vm2, %v1872_v18  ;;  %v1877_v22 = vsel %vm1749_vm7, %v2445_v47, %v1813_v56  ;;  %v1627_v4 = vadd.f32 1.0, %v3058_v59  ;;  %2474 = vpow2.f32 %v1521_v52  ;;  %v1443_v12 = vsub.f32 0.0, %v1379_v63 }
 0x1d4   : > { %v2453_v10 = vpop.eup %2452  ;;  %1942 = vst.msk [vmem:[%s3010_s13 + $0x30] sm:$0xff] %vm1935_vm2, %v1877_v22  ;;  %v1811_v20 = vmul.f32 %v2451_v3, %v2980_v36  ;;  %2476 = vrcp.f32 %v1629_v60  ;;  %v1200_v14 = vpop.f32.mrf.mxu1  ;;  %v1531_v55 = vmul.f32 1.442695, %v1445_v37  ;;  %v1382_v30 = vand.u32 2147483647, %v3077_v19 }
 0x1d5   : > { %v3073_v16 = vpop.eup %2454  ;;  %v1814_v24 = vmul.f32 %v2453_v10, %v2984_v41  ;;  %2478 = vrcp.f32 %v1627_v4  ;;  %v1527_v25 = vmul.f32 1.442695, %v1443_v12  ;;  %v1380_v35 = vand.u32 2147483647, %v3083_v27 }
 0x1d6   : > { %v2457_v21 = vpop.eup %2456  ;;  %v1875_v36 = vsel %vm1747_vm8, %v2451_v3, %v1811_v20  ;;  %v1630_v23 = vadd.f32 1.0, %v3073_v16  ;;  %v2332_v28 = vpop.f32.mrf.mxu1  ;;  %2480 = vpow2.f32 %v1531_v55  ;;  %v3107_v43 = vadd.f32 %v2331_v1, %v2900_v7 }
 0x1d7   : > { %v3085_v29 = vpop.eup %2458  ;;  %1940 = vst.msk [vmem:[%s3010_s13 + $0x20] sm:$0xff] %vm1935_vm2, %v1875_v36  ;;  %v1878_v41 = vsel %vm1750_vm9, %v2453_v10, %v1814_v24  ;;  %v1812_v9 = vmul.f32 %v2457_v21, %v2994_v51  ;;  %v1446_v51 = vsub.f32 0.0, %v1382_v30  ;;  %v1444_v5 = vsub.f32 0.0, %v1380_v35 }
 0x1d8   : > { %1943 = vst.msk [vmem:[%s3010_s13 + $0x38] sm:$0xff] %vm1935_vm2, %v1878_v41  ;;  %2482 = vrcp.f32 %v1630_v23  ;;  %v1628_v62 = vadd.f32 1.0, %v3085_v29  ;;  %v1203_v38 = vpop.f32.mrf.mxu1  ;;  %v3112_v54 = vadd.f32 %v2900_v7, %v1200_v14  ;;  %v1385_v60 = vand.u32 2147483647, %v3107_v43 }
 0x1d9   : > { %v2461_v39 = vpop.eup %2460  ;;  %v1876_v33 = vsel %vm1748_vm10, %v2457_v21, %v1812_v9  ;;  %2484 = vpow2.f32 %v1527_v25  ;;  %v1533_v52 = vmul.f32 1.442695, %v1446_v51  ;;  %v1529_v18 = vmul.f32 1.442695, %v1444_v5 }
 0x1da   : > { %v3101_v42 = vpop.eup %2462  ;;  %1941 = vst.msk [vmem:[%s3010_s13 + $0x28] sm:$0xff] %vm1935_vm2, %v1876_v33  ;;  %v1817_v11 = vmul.f32 %v2461_v39, %v3005_v2  ;;  %2486 = vrcp.f32 %v1628_v62  ;;  %v2335_v47 = vpop.f32.mrf.mxu1  ;;  %v1383_v22 = vand.u32 2147483647, %v3112_v54  ;;  %v3127_v4 = vadd.f32 %v2332_v28, %v2900_v7 }
 0x1db   : > { %v2465_v48 = vpop.eup %2464  ;;  %v1633_v40 = vadd.f32 1.0, %v3101_v42  ;;  %v1449_v10 = vsub.f32 0.0, %v1385_v60  ;;  %v3156_v30 = vadd.f32 %v2900_v7, %v1203_v38  ;;  %vm1756_vm3 = vcmp.ge.f32.partialorder %v2977_v31, 0.0 }
 0x1dc   : > { %v3114_v56 = vpop.eup %2466  ;;  %v1881_v2 = vsel %vm1753_vm11, %v2461_v39, %v1817_v11  ;;  %v1815_v58 = vmul.f32 %v2465_v48, %v3019_v17  ;;  %v3120_v63 = vpop.f32.mrf.mxu1  ;;  %v1447_v24 = vsub.f32 0.0, %v1383_v22  ;;  %v1386_v41 = vand.u32 2147483647, %v3127_v4 }
 0x1dd   : > { %v2469_v1 = vpop.eup %2468  ;;  %1946 = vst.msk [vmem:[%s3010_s13 + $0x50] sm:$0xff] %vm1935_vm2, %v1881_v2  ;;  %2488 = vrcp.f32 %v1633_v40  ;;  %v1631_v3 = vadd.f32 1.0, %v3114_v56  ;;  %v1539_v21 = vmul.f32 1.442695, %v1449_v10  ;;  %v3160_v39 = vadd.f32 %v2335_v47, %v2900_v7 }
 0x1de   : > { %v2471_v46 = vpop.eup %2470  ;;  %v1879_v17 = vsel %vm1751_vm12, %v2465_v48, %v1815_v58  ;;  %v1818_v37 = vmul.f32 %v2469_v1, %v3029_v32  ;;  %2490 = vpow2.f32 %v1533_v52  ;;  %v2336_v20 = vpop.f32.mrf.mxu1  ;;  %v1535_v28 = vmul.f32 1.442695, %v1447_v24 }
 0x1df   : > { %v3132_v12 = vpop.eup %2472  ;;  %1944 = vst.msk [vmem:[%s3010_s13 + $0x40] sm:$0xff] %vm1935_vm2, %v1879_v17  ;;  %v1816_v14 = vmul.f32 %v2471_v46, %v3035_v34  ;;  %2492 = vrcp.f32 %v1631_v3  ;;  %v1450_v35 = vsub.f32 0.0, %v1386_v41  ;;  %v1384_v38 = vand.u32 2147483647, %v3156_v30 }
 0x1e0   : > { %v3138_v55 = vpop.eup %2474  ;;  %v1882_v50 = vsel %vm1754_vm13, %v2469_v1, %v1818_v37  ;;  %v1634_v32 = vadd.f32 1.0, %v3132_v12  ;;  %2494 = vpow2.f32 %v1529_v18  ;;  %v3143_v36 = vpop.f32.mrf.mxu1  ;;  %v1389_v52 = vand.u32 2147483647, %v3160_v39 }
 0x1e1   : > { %v2477_v23 = vpop.eup %2476  ;;  %1947 = vst.msk [vmem:[%s3010_s13 + $0x58] sm:$0xff] %vm1935_vm2, %v1882_v50  ;;  %v1880_v34 = vsel %vm1752_vm14, %v2471_v46, %v1816_v14  ;;  %v1632_v25 = vadd.f32 1.0, %v3138_v55  ;;  %v1541_v47 = vmul.f32 1.442695, %v1450_v35  ;;  %v1448_v40 = vsub.f32 0.0, %v1384_v38 }
 0x1e2   : > { %v2479_v9 = vpop.eup %2478  ;;  %1945 = vst.msk [vmem:[%s3010_s13 + $0x48] sm:$0xff] %vm1935_vm2, %v1880_v34  ;;  %v1821_v57 = vmul.f32 %v2477_v23, %v3053_v15  ;;  %2496 = vrcp.f32 %v1634_v32  ;;  %v2339_v62 = vpop.f32.mrf.mxu1  ;;  %v3185_v18 = vadd.f32 %v2900_v7, %v3120_v63  ;;  %v3188_v60 = vadd.f32 %v2336_v20, %v2900_v7 }
 0x1e3   : > { %v1819_v61 = vmul.f32 %v2479_v9, %v3058_v59  ;;  %2498 = vrcp.f32 %v1632_v25  ;;  %v3162_v33 = vpop.eup %2480  ;;  %v1537_v3 = vmul.f32 1.442695, %v1448_v40  ;;  %vm1761_vm4 = vcmp.ge.f32.partialorder %v2988_v44, 0.0 }
 0x1e4   : > { %v1885_v15 = vsel %vm1757_vm15, %v2477_v23, %v1821_v57  ;;  %2500 = vpow2.f32 %v1539_v21  ;;  %v1232_v51 = vpop.f32.mrf.mxu1  ;;  %v1637_v5 = vadd.f32 1.0, %v3162_v33  ;;  %v1453_v63 = vsub.f32 0.0, %v1389_v52 }
 0x1e5   : > { %v2483_v11 = vpop.eup %2482  ;;  %1950 = vst.msk [vmem:[%s3010_s13 + $0x70] sm:$0xff] %vm1935_vm2, %v1885_v15  ;;  %v1883_v59 = vsel %vm1755_vm0, %v2479_v9, %v1819_v61  ;;  %2502 = vpow2.f32 %v1535_v28  ;;  %v1387_v46 = vand.u32 2147483647, %v3185_v18  ;;  %vm1759_vm5 = vcmp.ge.f32.partialorder %v2992_v49, 0.0 }
 0x1e6   : > { %v3173_v48 = vpop.eup %2484  ;;  %1948 = vst.msk [vmem:[%s3010_s13 + $0x60] sm:$0xff] %vm1935_vm2, %v1883_v59  ;;  %v1822_v8 = vmul.f32 %v2483_v11, %v3073_v16  ;;  %v3180_v2 = vpop.f32.mrf.mxu1  ;;  %2504 = vrcp.f32 %v1637_v5  ;;  %v1547_v14 = vmul.f32 1.442695, %v1453_v63  ;;  %v3212_v31 = vadd.f32 %v2900_v7, %v3143_v36 }
 0x1e7   : > { %v2487_v13 = vpop.eup %2486  ;;  %v1635_v58 = vadd.f32 1.0, %v3173_v48  ;;  %2506 = vpow2.f32 %v1541_v47  ;;  %v1451_v24 = vsub.f32 0.0, %v1387_v46  ;;  %v3216_v23 = vadd.f32 %v2339_v62, %v2900_v7 }
 0x1e8   : > { %v1886_v16 = vsel %vm1758_vm1, %v2483_v11, %v1822_v8  ;;  %v1820_v1 = vmul.f32 %v2487_v13, %v3085_v29  ;;  %v3193_v22 = vpop.f32.mrf.mxu1  ;;  %v1390_v29 = vand.u32 2147483647, %v3188_v60  ;;  %v3219_v34 = vadd.f32 %v2900_v7, %v1232_v51 }
 0x1e9   : > { %1951 = vst.msk [vmem:[%s3010_s13 + $0x78] sm:$0xff] %vm1935_vm2, %v1886_v16  ;;  %2508 = vrcp.f32 %v1635_v58  ;;  %v1543_v41 = vmul.f32 1.442695, %v1451_v24  ;;  %v1388_v62 = vand.u32 2147483647, %v3212_v31  ;;  %vm1762_vm6 = vcmp.ge.f32.partialorder %v3003_v0, 0.0 }
 0x1ea   : > { %v2489_v17 = vpop.eup %2488  ;;  %v1884_v26 = vsel %vm1756_vm3, %v2487_v13, %v1820_v1  ;;  %2510 = vpow2.f32 %v1537_v3  ;;  %v3203_v37 = vpop.f32.mrf.mxu1  ;;  %v1454_v21 = vsub.f32 0.0, %v1390_v29  ;;  %vm1760_vm7 = vcmp.ge.f32.partialorder %v3015_v6, 0.0 }
 0x1eb   : > { %v3205_v10 = vpop.eup %2490  ;;  %1949 = vst.msk [vmem:[%s3010_s13 + $0x68] sm:$0xff] %vm1935_vm2, %v1884_v26  ;;  %v1825_v20 = vmul.f32 %v2489_v17, %v3101_v42  ;;  %2512 = vpow2.f32 %v1547_v14  ;;  %v1452_v51 = vsub.f32 0.0, %v1388_v62  ;;  %v1391_v47 = vand.u32 2147483647, %v3219_v34 }
 0x1ec   : > { %v2493_v50 = vpop.eup %2492  ;;  %v1638_v32 = vadd.f32 1.0, %v3205_v10  ;;  %v1248_v25 = vpop.f32.mrf.mxu1  ;;  %v1549_v57 = vmul.f32 1.442695, %v1454_v21  ;;  %vm1765_vm8 = vcmp.ge.f32.partialorder %v3045_v45, 0.0  ;;  %vm1763_vm9 = vcmp.ge.f32.partialorder %v3051_v53, 0.0 }
 0x1ed   : > { %v3221_v28 = vpop.eup %2494  ;;  %v1889_v42 = vsel %vm1761_vm4, %v2489_v17, %v1825_v20  ;;  %v1823_v36 = vmul.f32 %v2493_v50, %v3114_v56  ;;  %v1393_v56 = vand.u32 2147483647, %v3216_v23  ;;  %v1545_v52 = vmul.f32 1.442695, %v1452_v51 }
 0x1ee   : > { %1954 = vst.msk [vmem:[%s3010_s13 + $0x90] sm:$0xff] %vm1935_vm2, %v1889_v42  ;;  %2514 = vrcp.f32 %v1638_v32  ;;  %v1636_v9 = vadd.f32 1.0, %v3221_v28  ;;  %v3230_v61 = vpop.f32.mrf.mxu1  ;;  %v1455_v1 = vsub.f32 0.0, %v1391_v47  ;;  %v3264_v0 = vadd.f32 %v3180_v2, %v2900_v7 }
 0x1ef   : > { %v2497_v35 = vpop.eup %2496  ;;  %v1887_v44 = vsel %vm1759_vm5, %v2493_v50, %v1823_v36  ;;  %2516 = vpow2.f32 %v1543_v41  ;;  %v1457_v5 = vsub.f32 0.0, %v1393_v56  ;;  %v3268_v63 = vadd.f32 %v2900_v7, %v3193_v22 }
 0x1f0   : > { %v2499_v15 = vpop.eup %2498  ;;  %1952 = vst.msk [vmem:[%s3010_s13 + $0x80] sm:$0xff] %vm1935_vm2, %v1887_v44  ;;  %v1826_v38 = vmul.f32 %v2497_v35, %v3132_v12  ;;  %2518 = vrcp.f32 %v1636_v9  ;;  %v3240_v11 = vpop.f32.mrf.mxu1  ;;  %v1551_v26 = vmul.f32 1.442695, %v1455_v1  ;;  %v3277_v29 = vadd.f32 %v3203_v37, %v2900_v7 }
 0x1f1   : > { %v3242_v59 = vpop.eup %2500  ;;  %v1824_v49 = vmul.f32 %v2499_v15, %v3138_v55  ;;  %2520 = vpow2.f32 %v1549_v57  ;;  %v1555_v16 = vmul.f32 1.442695, %v1457_v5  ;;  %v1394_v22 = vand.u32 2147483647, %v3264_v0 }
 0x1f2   : > { %v3246_v8 = vpop.eup %2502  ;;  %v1890_v12 = vsel %vm1762_vm6, %v2497_v35, %v1826_v38  ;;  %v1641_v40 = vadd.f32 1.0, %v3242_v59  ;;  %v3252_v13 = vpop.f32.mrf.mxu1  ;;  %v3282_v14 = vadd.f32 %v2900_v7, %v1248_v25  ;;  %v1392_v32 = vand.u32 2147483647, %v3268_v63 }
 0x1f3   : > { %1955 = vst.msk [vmem:[%s3010_s13 + $0x98] sm:$0xff] %vm1935_vm2, %v1890_v12  ;;  %v1888_v55 = vsel %vm1760_vm7, %v2499_v15, %v1824_v49  ;;  %v1639_v58 = vadd.f32 1.0, %v3246_v8  ;;  %v2505_v3 = vpop.eup %2504  ;;  %vm1766_vm10 = vcmp.ge.f32.partialorder %v3077_v19, 0.0  ;;  %v1458_v25 = vsub.f32 0.0, %v1394_v22 }
 0x1f4   : > { %1953 = vst.msk [vmem:[%s3010_s13 + $0x88] sm:$0xff] %vm1935_vm2, %v1888_v55  ;;  %2522 = vrcp.f32 %v1641_v40  ;;  %v3270_v6 = vpop.f32.mrf.mxu1  ;;  %v3272_v46 = vpop.eup %2506  ;;  %v1829_v17 = vmul.f32 %v2505_v3, %v3162_v33  ;;  %v1456_v36 = vsub.f32 0.0, %v1392_v32  ;;  %vm1764_vm11 = vcmp.ge.f32.partialorder %v3083_v27, 0.0 }
 0x1f5   : > { %2524 = vrcp.f32 %v1639_v58  ;;  %v1642_v2 = vadd.f32 1.0, %v3272_v46  ;;  %v1557_v9 = vmul.f32 1.442695, %v1458_v25  ;;  %v1395_v57 = vand.u32 2147483647, %v3282_v14 }
 0x1f6   : > { %v2509_v20 = vpop.eup %2508  ;;  %2526 = vpow2.f32 %v1545_v52  ;;  %v3284_v24 = vpop.f32.mrf.mxu1  ;;  %v1893_v33 = vsel %vm1765_vm8, %v2505_v3, %v1829_v17  ;;  %vm1769_vm12 = vcmp.ge.f32.partialorder %v3107_v43, 0.0  ;;  %v1553_v44 = vmul.f32 1.442695, %v1456_v36 }
 0x1f7   : > { %v3286_v50 = vpop.eup %2510  ;;  %v1827_v37 = vmul.f32 %v2509_v20, %v3173_v48  ;;  %2528 = vpow2.f32 %v1555_v16  ;;  %1958 = vst.msk [vmem:[%s3010_s13 + $0xb0] sm:$0xff] %vm1935_vm2, %v1893_v33  ;;  %v1397_v48 = vand.u32 2147483647, %v3277_v29  ;;  %v1459_v51 = vsub.f32 0.0, %v1395_v57 }
 0x1f8   : > { %2530 = vrcp.f32 %v1642_v2  ;;  %v1640_v21 = vadd.f32 1.0, %v3286_v50  ;;  %v3296_v42 = vpop.f32.mrf.mxu1  ;;  %v3301_v41 = vpop.eup %2512  ;;  %v3316_v49 = vadd.f32 %v3230_v61, %v2900_v7  ;;  %v3323_v52 = vadd.f32 %v2900_v7, %v3240_v11 }
 0x1f9   : > { %v1891_v45 = vsel %vm1763_vm9, %v2509_v20, %v1827_v37  ;;  %2532 = vpow2.f32 %v1551_v26  ;;  %v1645_v53 = vadd.f32 1.0, %v3301_v41  ;;  %v1461_v56 = vsub.f32 0.0, %v1397_v48 }
 0x1fa   : > { %1956 = vst.msk [vmem:[%s3010_s13 + $0xa0] sm:$0xff] %vm1935_vm2, %v1891_v45  ;;  %2534 = vrcp.f32 %v1640_v21  ;;  %v3307_v62 = vpop.f32.mrf.mxu1  ;;  %v1559_v58 = vmul.f32 1.442695, %v1459_v51  ;;  %vm1767_vm13 = vcmp.ge.f32.partialorder %v3112_v54, 0.0  ;;  %v1398_v1 = vand.u32 2147483647, %v3316_v49 }
 0x1fb   : > { %v2515_v35 = vpop.eup %2514  ;;  %2536 = vpow2.f32 %v1557_v9  ;;  %v1563_v40 = vmul.f32 1.442695, %v1461_v56  ;;  %vm1770_vm14 = vcmp.ge.f32.partialorder %v3127_v4, 0.0  ;;  %v3347_v20 = vadd.f32 %v3252_v13, %v2900_v7 }
 0x1fc   : > { %v3311_v15 = vpop.eup %2516  ;;  %v1830_v38 = vmul.f32 %v2515_v35, %v3205_v10  ;;  %v3318_v5 = vpop.f32.mrf.mxu1  ;;  %2538 = vrcp.f32 %v1645_v53  ;;  %v1462_v26 = vsub.f32 0.0, %v1398_v1  ;;  %v3351_v27 = vadd.f32 %v2900_v7, %v3270_v6 }
 0x1fd   : > { %v2519_v47 = vpop.eup %2518  ;;  %v1643_v12 = vadd.f32 1.0, %v3311_v15  ;;  %2540 = vpow2.f32 %v1553_v44  ;;  %vm1768_vm15 = vcmp.ge.f32.partialorder %v3156_v30, 0.0  ;;  %v1401_v25 = vand.u32 2147483647, %v3347_v20 }
 0x1fe   : > { %v3325_v55 = vpop.eup %2520  ;;  %v1894_v10 = vsel %vm1766_vm10, %v2515_v35, %v1830_v38  ;;  %v1828_v61 = vmul.f32 %v2519_v47, %v3221_v28  ;;  %v3330_v16 = vpop.f32.mrf.mxu1  ;;  %v1396_v28 = vand.u32 2147483647, %v3323_v52  ;;  %v1565_v13 = vmul.f32 1.442695, %v1462_v26 }
 0x1ff   : > { %1959 = vst.msk [vmem:[%s3010_s13 + $0xb8] sm:$0xff] %vm1935_vm2, %v1894_v10  ;;  %2542 = vrcp.f32 %v1643_v12  ;;  %v1646_v11 = vadd.f32 1.0, %v3325_v55  ;;  %v3363_v6 = vadd.f32 %v3284_v24, %v2900_v7  ;;  %v1399_v9 = vand.u32 2147483647, %v3351_v27 }
 0x200   : > { %v1892_v19 = vsel %vm1764_vm11, %v2519_v47, %v1828_v61  ;;  %2544 = vpow2.f32 %v1563_v40  ;;  %v3341_v3 = vpop.f32.mrf.mxu1  ;;  %v1460_v33 = vsub.f32 0.0, %v1396_v28  ;;  %v1465_v53 = vsub.f32 0.0, %v1401_v25  ;;  %v3408_v28 = vld [vmem:[%s3766_s4] ss:$0 sm:$0xff] }
 0x201   : > { %v2523_v17 = vpop.eup %2522  ;;  %1957 = vst.msk [vmem:[%s3010_s13 + $0xa8] sm:$0xff] %vm1935_vm2, %v1892_v19  ;;  %2546 = vrcp.f32 %v1646_v11  ;;  %vm1773_vm0 = vcmp.ge.f32.partialorder %v3160_v39, 0.0  ;;  %v1463_v56 = vsub.f32 0.0, %v1399_v9  ;;  %v1402_v12 = vand.u32 2147483647, %v3363_v6 }
 0x202   : > { %v2525_v2 = vpop.eup %2524  ;;  %v1833_v22 = vmul.f32 %v2523_v17, %v3242_v59  ;;  %2548 = vpow2.f32 %v1559_v58  ;;  %v3355_v37 = vpop.f32.mrf.mxu1  ;;  %v1561_v48 = vmul.f32 1.442695, %v1460_v33  ;;  %v1571_v47 = vmul.f32 1.442695, %v1465_v53 }
 0x203   : > { %v3357_v32 = vpop.eup %2526  ;;  %v1831_v21 = vmul.f32 %v2525_v2, %v3246_v8  ;;  %2550 = vpow2.f32 %v1565_v13  ;;  %vm1771_vm1 = vcmp.ge.f32.partialorder %v3185_v18, 0.0  ;;  %v1466_v11 = vsub.f32 0.0, %v1402_v12 }
 0x204   : > { %v3365_v59 = vpop.eup %2528  ;;  %v1897_v45 = vsel %vm1769_vm12, %v2523_v17, %v1833_v22  ;;  %v1644_v36 = vadd.f32 1.0, %v3357_v32  ;;  %v3371_v57 = vpop.f32.mrf.mxu1  ;;  %v3400_v1 = vadd.f32 %v2900_v7, %v3296_v42  ;;  %v3412_v17 = vadd.f32 %v3408_v28, %v3307_v62 }
 0x205   : > { %v2531_v8 = vpop.eup %2530  ;;  %1962 = vst.msk [vmem:[%s3010_s13 + $0xd0] sm:$0xff] %vm1935_vm2, %v1897_v45  ;;  %v1895_v35 = vsel %vm1767_vm13, %v2525_v2, %v1831_v21  ;;  %v1649_v24 = vadd.f32 1.0, %v3365_v59  ;;  %v1573_v42 = vmul.f32 1.442695, %v1466_v11  ;;  %vm1774_vm3 = vcmp.ge.f32.partialorder %v3188_v60, 0.0 }
 0x206   : > { %v3378_v44 = vpop.eup %2532  ;;  %1960 = vst.msk [vmem:[%s3010_s13 + $0xc0] sm:$0xff] %vm1935_vm2, %v1895_v35  ;;  %v1834_v43 = vmul.f32 %v2531_v8, %v3272_v46  ;;  %2552 = vrcp.f32 %v1644_v36  ;;  %v3384_v38 = vpop.f32.mrf.mxu1  ;;  %v1567_v46 = vmul.f32 1.442695, %v1463_v56  ;;  %v1400_v2 = vand.u32 2147483647, %v3400_v1 }
 0x207   : > { %v2535_v51 = vpop.eup %2534  ;;  %2554 = vrcp.f32 %v1649_v24  ;;  %v1647_v54 = vadd.f32 1.0, %v3378_v44  ;;  %v1405_v33 = vand.u32 2147483647, %v3412_v17  ;;  %vm1772_vm4 = vcmp.ge.f32.partialorder %v3212_v31, 0.0 }
 0x208   : > { %v1898_v40 = vsel %vm1770_vm14, %v2531_v8, %v1834_v43  ;;  %v1832_v10 = vmul.f32 %v2535_v51, %v3286_v50  ;;  %2556 = vpow2.f32 %v1561_v48  ;;  %v3391_v61 = vpop.f32.mrf.mxu1  ;;  %v3393_v58 = vpop.eup %2536  ;;  %v1464_v45 = vsub.f32 0.0, %v1400_v2 }
 0x209   : > { %1963 = vst.msk [vmem:[%s3010_s13 + $0xd8] sm:$0xff] %vm1935_vm2, %v1898_v40  ;;  %2558 = vrcp.f32 %v1647_v54  ;;  %v2539_v4 = vpop.eup %2538  ;;  %v1650_v19 = vadd.f32 1.0, %v3393_v58  ;;  %v1469_v9 = vsub.f32 0.0, %v1405_v33  ;;  %v3443_v24 = vadd.f32 %v3408_v28, %v3318_v5 }
 0x20a   : > { %v1896_v50 = vsel %vm1768_vm15, %v2535_v51, %v1832_v10  ;;  %2560 = vpow2.f32 %v1571_v47  ;;  %v3414_v26 = vpop.f32.mrf.mxu1  ;;  %v3416_v7 = vpop.eup %2540  ;;  %v1837_v30 = vmul.f32 %v2539_v4, %v3301_v41  ;;  %v3452_v18 = vadd.f32 %v3408_v28, %v3330_v16 }
 0x20b   : > { %1961 = vst.msk [vmem:[%s3010_s13 + $0xc8] sm:$0xff] %vm1935_vm2, %v1896_v50  ;;  %2562 = vpow2.f32 %v1567_v46  ;;  %v1648_v62 = vadd.f32 1.0, %v3416_v7  ;;  %v1579_v56 = vmul.f32 1.442695, %v1469_v9  ;;  %vm1777_vm5 = vcmp.ge.f32.partialorder %v3216_v23, 0.0 }
 0x20c   : > { %v2543_v22 = vpop.eup %2542  ;;  %2564 = vrcp.f32 %v1650_v19  ;;  %v3425_v21 = vpop.f32.mrf.mxu1  ;;  %v1901_v41 = vsel %vm1773_vm0, %v2539_v4, %v1837_v30  ;;  %v1403_v5 = vand.u32 2147483647, %v3443_v24  ;;  %vm1775_vm6 = vcmp.ge.f32.partialorder %v3219_v34, 0.0 }
 0x20d   : > { %v3427_v13 = vpop.eup %2544  ;;  %v1835_v25 = vmul.f32 %v2543_v22, %v3311_v15  ;;  %2566 = vpow2.f32 %v1573_v42  ;;  %1966 = vst.msk [vmem:[%s3010_s13 + $0xf0] sm:$0xff] %vm1935_vm2, %v1901_v41  ;;  %v1569_v15 = vmul.f32 1.442695, %v1464_v45  ;;  %v1406_v54 = vand.u32 2147483647, %v3452_v18 }
 0x20e   : > { %v2547_v36 = vpop.eup %2546  ;;  %2568 = vrcp.f32 %v1648_v62  ;;  %v1653_v48 = vadd.f32 1.0, %v3427_v13  ;;  %v3445_v53 = vpop.f32.mrf.mxu1  ;;  %v3466_v16 = vadd.f32 %v3408_v28, %v3341_v3  ;;  %v1467_v12 = vsub.f32 0.0, %v1403_v5 }
 0x20f   : > { %v3436_v8 = vpop.eup %2548  ;;  %v1899_v39 = vsel %vm1771_vm1, %v2543_v22, %v1835_v25  ;;  %v1838_v35 = vmul.f32 %v2547_v36, %v3325_v55  ;;  %v3471_v40 = vadd.f32 %v3408_v28, %v3355_v37  ;;  %vm1778_vm7 = vcmp.ge.f32.partialorder %v3264_v0, 0.0 }
 0x210   : > { %1964 = vst.msk [vmem:[%s3010_s13 + $0xe0] sm:$0xff] %vm1935_vm2, %v1899_v39  ;;  %2570 = vrcp.f32 %v1653_v48  ;;  %v1651_v43 = vadd.f32 1.0, %v3436_v8  ;;  %v3458_v51 = vpop.eup %2550  ;;  %v3473_v10 = vpop.f32.mrf.mxu1  ;;  %v1470_v4 = vsub.f32 0.0, %v1406_v54  ;;  %v1404_v3 = vand.u32 2147483647, %v3466_v16 }
 0x211   : > { %v1902_v55 = vsel %vm1774_vm3, %v2547_v36, %v1838_v35  ;;  %2572 = vpow2.f32 %v1569_v15  ;;  %v1654_v47 = vadd.f32 1.0, %v3458_v51  ;;  %v1575_v30 = vmul.f32 1.442695, %v1467_v12 }
 0x212   : > { %1967 = vst.msk [vmem:[%s3010_s13 + $0xf8] sm:$0xff] %vm1935_vm2, %v1902_v55  ;;  %2574 = vrcp.f32 %v1651_v43  ;;  %v1409_v37 = vand.u32 2147483647, %v3471_v40  ;;  %v1581_v22 = vmul.f32 1.442695, %v1470_v4  ;;  %v1468_v62 = vsub.f32 0.0, %v1404_v3  ;;  %v3492_v45 = vpop.f32.mrf.mxu1 }
 0x213   : > { %v2553_v60 = vpop.eup %2552  ;;  %2576 = vpow2.f32 %v1579_v56  ;;  %vm1776_vm8 = vcmp.ge.f32.partialorder %v3268_v63, 0.0  ;;  %v3510_v43 = vadd.f32 %v3408_v28, %v3371_v57  ;;  %v3514_v34 = vadd.f32 %v3408_v28, %v3384_v38 }
 0x214   : > { %v2555_v46 = vpop.eup %2554  ;;  %v1836_v11 = vmul.f32 %v2553_v60, %v3357_v32  ;;  %2578 = vrcp.f32 %v1654_v47  ;;  %v1473_v25 = vsub.f32 0.0, %v1409_v37  ;;  %v1577_v48 = vmul.f32 1.442695, %v1468_v62  ;;  %v3525_v54 = vpop.f32.mrf.mxu1 }
 0x215   : > { %v3478_v50 = vpop.eup %2556  ;;  %v1841_v19 = vmul.f32 %v2555_v46, %v3365_v59  ;;  %2580 = vpow2.f32 %v1575_v30  ;;  %v3519_v5 = vadd.f32 %v3408_v28, %v3391_v61  ;;  %vm1781_vm9 = vcmp.ge.f32.partialorder %v3277_v29, 0.0 }
 0x216   : > { %v2559_v42 = vpop.eup %2558  ;;  %v1900_v2 = vsel %vm1772_vm4, %v2553_v60, %v1836_v11  ;;  %v1652_v32 = vadd.f32 1.0, %v3478_v50  ;;  %v1587_v39 = vmul.f32 1.442695, %v1473_v25  ;;  %v1407_v60 = vand.u32 2147483647, %v3510_v43 }
 0x217   : > { %v3485_v33 = vpop.eup %2560  ;;  %1965 = vst.msk [vmem:[%s3010_s13 + $0xe8] sm:$0xff] %vm1935_vm2, %v1900_v2  ;;  %v1905_v59 = vsel %vm1777_vm5, %v2555_v46, %v1841_v19  ;;  %v1839_v41 = vmul.f32 %v2559_v42, %v3378_v44  ;;  %vm1779_vm10 = vcmp.ge.f32.partialorder %v3282_v14, 0.0  ;;  %v1410_v61 = vand.u32 2147483647, %v3514_v34  ;;  %v3546_v19 = vpop.f32.mrf.mxu1 }
 0x218   : > { %v3494_v31 = vpop.eup %2562  ;;  %1970 = vst.msk [vmem:[%s3010_s13 + $0x110] sm:$0xff] %vm1935_vm2, %v1905_v59  ;;  %2582 = vrcp.f32 %v1652_v32  ;;  %v1657_v36 = vadd.f32 1.0, %v3485_v33  ;;  %v1471_v12 = vsub.f32 0.0, %v1407_v60  ;;  %vm1782_vm11 = vcmp.ge.f32.partialorder %v3316_v49, 0.0 }
 0x219   : > { %v2565_v9 = vpop.eup %2564  ;;  %v1903_v23 = vsel %vm1775_vm6, %v2559_v42, %v1839_v41  ;;  %v1655_v44 = vadd.f32 1.0, %v3494_v31  ;;  %2584 = vpow2.f32 %v1581_v22  ;;  %v1474_v4 = vsub.f32 0.0, %v1410_v61 }
 0x21a   : > { %v3503_v35 = vpop.eup %2566  ;;  %1968 = vst.msk [vmem:[%s3010_s13 + $0x100] sm:$0xff] %vm1935_vm2, %v1903_v23  ;;  %v1842_v15 = vmul.f32 %v2565_v9, %v3393_v58  ;;  %2586 = vrcp.f32 %v1657_v36  ;;  %v3523_v58 = vadd.f32 %v3408_v28, %v3414_v26  ;;  %v1408_v3 = vand.u32 2147483647, %v3519_v5  ;;  %v3567_v36 = vpop.f32.mrf.mxu1 }
 0x21b   : > { %v2569_v56 = vpop.eup %2568  ;;  %2588 = vrcp.f32 %v1655_v44  ;;  %v1658_v55 = vadd.f32 1.0, %v3503_v35  ;;  %v1583_v37 = vmul.f32 1.442695, %v1471_v12  ;;  %v1589_v32 = vmul.f32 1.442695, %v1474_v4 }
 0x21c   : > { %v1906_v57 = vsel %vm1778_vm7, %v2565_v9, %v1842_v15  ;;  %v1840_v38 = vmul.f32 %v2569_v56, %v3416_v7  ;;  %2590 = vpow2.f32 %v1577_v48  ;;  %v1413_v42 = vand.u32 2147483647, %v3523_v58 }
 0x21d   : > { %v2571_v47 = vpop.eup %2570  ;;  %1971 = vst.msk [vmem:[%s3010_s13 + $0x118] sm:$0xff] %vm1935_vm2, %v1906_v57  ;;  %2592 = vrcp.f32 %v1658_v55  ;;  %v1472_v22 = vsub.f32 0.0, %v1408_v3  ;;  %vm1780_vm12 = vcmp.ge.f32.partialorder %v3323_v52, 0.0  ;;  %v3565_v25 = vadd.f32 %v3408_v28, %v3425_v21  ;;  %v3592_v57 = vpop.f32.mrf.mxu1 }
 0x21e   : > { %v3536_v26 = vpop.eup %2572  ;;  %v1904_v0 = vsel %vm1776_vm8, %v2569_v56, %v1840_v38  ;;  %v1845_v7 = vmul.f32 %v2571_v47, %v3427_v13  ;;  %2594 = vpow2.f32 %v1587_v39  ;;  %v1477_v29 = vsub.f32 0.0, %v1413_v42 }
 0x21f   : > { %v2575_v46 = vpop.eup %2574  ;;  %1969 = vst.msk [vmem:[%s3010_s13 + $0x108] sm:$0xff] %vm1935_vm2, %v1904_v0  ;;  %v1656_v11 = vadd.f32 1.0, %v3536_v26  ;;  %v1585_v41 = vmul.f32 1.442695, %v1472_v22  ;;  %v3573_v9 = vadd.f32 %v3408_v28, %v3445_v53  ;;  %v1411_v39 = vand.u32 2147483647, %v3565_v25 }
 0x220   : > { %v3548_v63 = vpop.eup %2576  ;;  %v1909_v13 = vsel %vm1781_vm9, %v2571_v47, %v1845_v7  ;;  %v1843_v30 = vmul.f32 %v2575_v46, %v3436_v8  ;;  %v1595_v14 = vmul.f32 1.442695, %v1477_v29  ;;  %vm1785_vm13 = vcmp.ge.f32.partialorder %v3347_v20, 0.0  ;;  %v1344_v20 = vpop.f32.mrf.mxu1 }
 0x221   : > { %1974 = vst.msk [vmem:[%s3010_s13 + $0x130] sm:$0xff] %vm1935_vm2, %v1909_v13  ;;  %2596 = vrcp.f32 %v1656_v11  ;;  %v1661_v2 = vadd.f32 1.0, %v3548_v63  ;;  %v2579_v62 = vpop.eup %2578  ;;  %vm1783_vm14 = vcmp.ge.f32.partialorder %v3351_v27, 0.0  ;;  %v1475_v55 = vsub.f32 0.0, %v1411_v39 }
 0x222   : > { %v1907_v59 = vsel %vm1779_vm10, %v2575_v46, %v1843_v30  ;;  %2598 = vpow2.f32 %v1583_v37  ;;  %v1846_v8 = vmul.f32 %v2579_v62, %v3458_v51  ;;  %v3569_v48 = vpop.eup %2580  ;;  %v3577_v51 = vadd.f32 %v3408_v28, %v3473_v10  ;;  %v2368_v29 = vpop.f32.mrf.mxu1 }
 0x223   : > { %1972 = vst.msk [vmem:[%s3010_s13 + $0x120] sm:$0xff] %vm1935_vm2, %v1907_v59  ;;  %2600 = vrcp.f32 %v1661_v2  ;;  %v1659_v21 = vadd.f32 1.0, %v3569_v48  ;;  %v1414_v10 = vand.u32 2147483647, %v3573_v9  ;;  %vm1786_vm15 = vcmp.ge.f32.partialorder %v3363_v6, 0.0 }
 0x224   : > { %2602 = vpow2.f32 %v1589_v32  ;;  %v1910_v44 = vsel %vm1782_vm11, %v2579_v62, %v1846_v8  ;;  %v1412_v61 = vand.u32 2147483647, %v3577_v51  ;;  %v1591_v12 = vmul.f32 1.442695, %v1475_v55 }
 0x225   : > { %v2583_v23 = vpop.eup %2582  ;;  %2604 = vpow2.f32 %v1585_v41  ;;  %1975 = vst.msk [vmem:[%s3010_s13 + $0x138] sm:$0xff] %vm1935_vm2, %v1910_v44  ;;  %v1478_v47 = vsub.f32 0.0, %v1414_v10  ;;  %v3616_v30 = vadd.f32 %v3408_v28, %v3492_v45  ;;  %v3623_v2 = vadd.f32 %v3408_v28, %v3525_v54 }
 0x226   : > { %v3583_v15 = vpop.eup %2584  ;;  %v1844_v53 = vmul.f32 %v2583_v23, %v3478_v50  ;;  %2606 = vpow2.f32 %v1595_v14  ;;  %v1476_v4 = vsub.f32 0.0, %v1412_v61  ;;  %vm1784_vm0 = vcmp.ge.f32.partialorder %v3400_v1, 0.0 }
 0x227   : > { %v2587_v56 = vpop.eup %2586  ;;  %2608 = vrcp.f32 %v1659_v21  ;;  %v1662_v49 = vadd.f32 1.0, %v3583_v15  ;;  %v1597_v11 = vmul.f32 1.442695, %v1478_v47  ;;  %v1415_v45 = vand.u32 2147483647, %v3623_v2 }
 0x228   : > { %v2589_v38 = vpop.eup %2588  ;;  %v1908_v60 = vsel %vm1780_vm12, %v2583_v23, %v1844_v53  ;;  %v1849_v50 = vmul.f32 %v2587_v56, %v3485_v33  ;;  %v1593_v42 = vmul.f32 1.442695, %v1476_v4  ;;  %v3634_v22 = vadd.f32 %v3408_v28, %v3546_v19 }
 0x229   : > { %v3598_v0 = vpop.eup %2590  ;;  %1973 = vst.msk [vmem:[%s3010_s13 + $0x128] sm:$0xff] %vm1935_vm2, %v1908_v60  ;;  %v1847_v7 = vmul.f32 %v2589_v38, %v3494_v31  ;;  %2610 = vrcp.f32 %v1662_v49  ;;  %v3641_v59 = vadd.f32 %v3408_v28, %v3567_v36  ;;  %vm1789_vm1 = vcmp.ge.f32.partialorder %v3412_v17, 0.0 }
 0x22a   : > { %v2593_v46 = vpop.eup %2592  ;;  %v1913_v52 = vsel %vm1785_vm13, %v2587_v56, %v1849_v50  ;;  %v1660_v33 = vadd.f32 1.0, %v3598_v0  ;;  %2612 = vpow2.f32 %v1591_v12  ;;  %v1479_v14 = vsub.f32 0.0, %v1415_v45 }
 0x22b   : > { %v3607_v3 = vpop.eup %2594  ;;  %1978 = vst.msk [vmem:[%s3010_s13 + $0x150] sm:$0xff] %vm1935_vm2, %v1913_v52  ;;  %v1911_v31 = vsel %vm1783_vm14, %v2589_v38, %v1847_v7  ;;  %v1850_v13 = vmul.f32 %v2593_v46, %v3503_v35  ;;  %v1417_v35 = vand.u32 2147483647, %v3616_v30  ;;  %v1418_v19 = vand.u32 2147483647, %v3634_v22  ;;  %v1347_v38 = vpop.f32.mrf.mxu1 }
 0x22c   : > { %1976 = vst.msk [vmem:[%s3010_s13 + $0x140] sm:$0xff] %vm1935_vm2, %v1911_v31  ;;  %2614 = vrcp.f32 %v1660_v33  ;;  %v1665_v37 = vadd.f32 1.0, %v3607_v3  ;;  %v1416_v36 = vand.u32 2147483647, %v3641_v59  ;;  %v1599_v10 = vmul.f32 1.442695, %v1479_v14 }
 0x22d   : > { %v1914_v27 = vsel %vm1786_vm15, %v2593_v46, %v1850_v13  ;;  %2616 = vpow2.f32 %v1597_v11  ;;  %v1481_v62 = vsub.f32 0.0, %v1417_v35  ;;  %v1482_v56 = vsub.f32 0.0, %v1418_v19 }
 0x22e   : > { %v2597_v32 = vpop.eup %2596  ;;  %1979 = vst.msk [vmem:[%s3010_s13 + $0x158] sm:$0xff] %vm1935_vm2, %v1914_v27  ;;  %2618 = vrcp.f32 %v1665_v37  ;;  %v1480_v55 = vsub.f32 0.0, %v1416_v36  ;;  %vm1787_vm3 = vcmp.ge.f32.partialorder %v3443_v24, 0.0  ;;  %v3669_v7 = vadd.f32 %v3408_v28, %v3592_v57 }
 0x22f   : > { %v3636_v54 = vpop.eup %2598  ;;  %v1848_v6 = vmul.f32 %v2597_v32, %v3536_v26  ;;  %2620 = vpow2.f32 %v1593_v42  ;;  %v1603_v21 = vmul.f32 1.442695, %v1481_v62  ;;  %v1605_v47 = vmul.f32 1.442695, %v1482_v56 }
 0x230   : > { %v2601_v8 = vpop.eup %2600  ;;  %v1663_v41 = vadd.f32 1.0, %v3636_v54  ;;  %v1601_v17 = vmul.f32 1.442695, %v1480_v55  ;;  %v3672_v46 = vadd.f32 %v3408_v28, %v1344_v20  ;;  %v3675_v24 = vadd.f32 %v3408_v28, %v2368_v29 }
 0x231   : > { %v3646_v23 = vpop.eup %2602  ;;  %v1912_v26 = vsel %vm1784_vm0, %v2597_v32, %v1848_v6  ;;  %v1853_v44 = vmul.f32 %v2601_v8, %v3548_v63  ;;  %v3678_v52 = vadd.f32 %v3408_v28, %v1347_v38  ;;  %v1421_v11 = vand.u32 2147483647, %v3669_v7 }
 0x232   : > { %v3652_v39 = vpop.eup %2604  ;;  %1977 = vst.msk [vmem:[%s3010_s13 + $0x148] sm:$0xff] %vm1935_vm2, %v1912_v26  ;;  %2622 = vrcp.f32 %v1663_v41  ;;  %v1666_v53 = vadd.f32 1.0, %v3646_v23  ;;  %vm1790_vm4 = vcmp.ge.f32.partialorder %v3452_v18, 0.0  ;;  %v1419_v4 = vand.u32 2147483647, %v3672_v46 }
 0x233   : > { %v3657_v49 = vpop.eup %2606  ;;  %v1917_v1 = vsel %vm1789_vm1, %v2601_v8, %v1853_v44  ;;  %v1664_v63 = vadd.f32 1.0, %v3652_v39  ;;  %2624 = vpow2.f32 %v1603_v21  ;;  %v1485_v20 = vsub.f32 0.0, %v1421_v11 }
 0x234   : > { %v2609_v60 = vpop.eup %2608  ;;  %1982 = vst.msk [vmem:[%s3010_s13 + $0x170] sm:$0xff] %vm1935_vm2, %v1917_v1  ;;  %2626 = vrcp.f32 %v1666_v53  ;;  %v1669_v50 = vadd.f32 1.0, %v3657_v49  ;;  %vm1788_vm5 = vcmp.ge.f32.partialorder %v3466_v16, 0.0  ;;  %v1483_v42 = vsub.f32 0.0, %v1419_v4 }
 0x235   : > { %v1851_v61 = vmul.f32 %v2609_v60, %v3569_v48  ;;  %2628 = vrcp.f32 %v1664_v63  ;;  %v1422_v18 = vand.u32 2147483647, %v3675_v24  ;;  %v1611_v32 = vmul.f32 1.442695, %v1485_v20 }
 0x236   : > { %v2611_v12 = vpop.eup %2610  ;;  %2630 = vrcp.f32 %v1669_v50  ;;  %v1420_v45 = vand.u32 2147483647, %v3678_v52  ;;  %v1607_v8 = vmul.f32 1.442695, %v1483_v42  ;;  %vm1793_vm6 = vcmp.ge.f32.partialorder %v3471_v40, 0.0 }
 0x237   : > { %v1915_v33 = vsel %vm1787_vm3, %v2609_v60, %v1851_v61  ;;  %v1854_v48 = vmul.f32 %v2611_v12, %v3583_v15  ;;  %2632 = vpow2.f32 %v1599_v10  ;;  %v3682_v57 = vpop.eup %2612  ;;  %v1486_v16 = vsub.f32 0.0, %v1422_v18 }
 0x238   : > { %1980 = vst.msk [vmem:[%s3010_s13 + $0x160] sm:$0xff] %vm1935_vm2, %v1915_v33  ;;  %2634 = vpow2.f32 %v1605_v47  ;;  %v1667_v28 = vadd.f32 1.0, %v3682_v57  ;;  %v1484_v41 = vsub.f32 0.0, %v1420_v45  ;;  %vm1791_vm7 = vcmp.ge.f32.partialorder %v3510_v43, 0.0 }
 0x239   : > { %v2615_v31 = vpop.eup %2614  ;;  %v1918_v13 = vsel %vm1790_vm4, %v2611_v12, %v1854_v48  ;;  %2636 = vpow2.f32 %v1601_v17  ;;  %v1613_v19 = vmul.f32 1.442695, %v1486_v16  ;;  %vm1794_vm8 = vcmp.ge.f32.partialorder %v3514_v34, 0.0 }
 0x23a   : > { %v3689_v37 = vpop.eup %2616  ;;  %1983 = vst.msk [vmem:[%s3010_s13 + $0x178] sm:$0xff] %vm1935_vm2, %v1918_v13  ;;  %v1852_v15 = vmul.f32 %v2615_v31, %v3598_v0  ;;  %2638 = vrcp.f32 %v1667_v28  ;;  %v1609_v44 = vmul.f32 1.442695, %v1484_v41  ;;  %vm1792_vm9 = vcmp.ge.f32.partialorder %v3519_v5, 0.0 }
 0x23b   : > { %v2619_v27 = vpop.eup %2618  ;;  %v1670_v35 = vadd.f32 1.0, %v3689_v37  ;;  %vm1797_vm10 = vcmp.ge.f32.partialorder %v3523_v58, 0.0  ;;  %vm1795_vm11 = vcmp.ge.f32.partialorder %v3565_v25, 0.0  ;;  %vm1798_vm12 = vcmp.ge.f32.partialorder %v3573_v9, 0.0 }
 0x23c   : > { %v3698_v6 = vpop.eup %2620  ;;  %v1916_v62 = vsel %vm1788_vm5, %v2615_v31, %v1852_v15  ;;  %v1857_v29 = vmul.f32 %v2619_v27, %v3607_v3  ;;  %vm1796_vm13 = vcmp.ge.f32.partialorder %v3577_v51, 0.0  ;;  %vm1801_vm14 = vcmp.ge.f32.partialorder %v3616_v30, 0.0 }
 0x23d   : > { %1981 = vst.msk [vmem:[%s3010_s13 + $0x168] sm:$0xff] %vm1935_vm2, %v1916_v62  ;;  %2640 = vrcp.f32 %v1670_v35  ;;  %v1668_v0 = vadd.f32 1.0, %v3698_v6  ;;  %vm1799_vm15 = vcmp.ge.f32.partialorder %v3623_v2, 0.0  ;;  %vm1802_vm0 = vcmp.ge.f32.partialorder %v3634_v22, 0.0 }
 0x23e   : > { %v1921_v14 = vsel %vm1793_vm6, %v2619_v27, %v1857_v29  ;;  %2642 = vpow2.f32 %v1611_v32  ;;  %vm1800_vm1 = vcmp.ge.f32.partialorder %v3641_v59, 0.0  ;;  %vm1805_vm3 = vcmp.ge.f32.partialorder %v3669_v7, 0.0 }
 0x23f   : > { %v2623_v26 = vpop.eup %2622  ;;  %1986 = vst.msk [vmem:[%s3010_s13 + $0x190] sm:$0xff] %vm1935_vm2, %v1921_v14  ;;  %2644 = vrcp.f32 %v1668_v0  ;;  %vm1803_vm4 = vcmp.ge.f32.partialorder %v3672_v46, 0.0  ;;  %vm1806_vm5 = vcmp.ge.f32.partialorder %v3675_v24, 0.0  ;;  %vm1804_vm6 = vcmp.ge.f32.partialorder %v3678_v52, 0.0 }
 0x240   : > { %v2625_v3 = vpop.eup %2624  ;;  %v1855_v21 = vmul.f32 %v2623_v26, %v3636_v54  ;;  %2646 = vpow2.f32 %v1607_v8 }
 0x241   : > { %v2627_v36 = vpop.eup %2626  ;;  %v1673_v40 = vadd.f32 1.0, %v2625_v3  ;;  %2648 = vpow2.f32 %v1613_v19 }
 0x242   : > { %v2629_v53 = vpop.eup %2628  ;;  %v1919_v10 = vsel %vm1791_vm7, %v2623_v26, %v1855_v21  ;;  %v1858_v56 = vmul.f32 %v2627_v36, %v3646_v23  ;;  %2650 = vpow2.f32 %v1609_v44 }
 0x243   : > { %v2631_v1 = vpop.eup %2630  ;;  %1984 = vst.msk [vmem:[%s3010_s13 + $0x180] sm:$0xff] %vm1935_vm2, %v1919_v10  ;;  %v1856_v54 = vmul.f32 %v2629_v53, %v3652_v39  ;;  %2652 = vrcp.f32 %v1673_v40 }
 0x244   : > { %v2633_v63 = vpop.eup %2632  ;;  %v1922_v43 = vsel %vm1794_vm8, %v2627_v36, %v1858_v56  ;;  %v1861_v55 = vmul.f32 %v2631_v1, %v3657_v49 }
 0x245   : > { %v2635_v38 = vpop.eup %2634  ;;  %1987 = vst.msk [vmem:[%s3010_s13 + $0x198] sm:$0xff] %vm1935_vm2, %v1922_v43  ;;  %v1920_v23 = vsel %vm1792_vm9, %v2629_v53, %v1856_v54  ;;  %v1671_v60 = vadd.f32 1.0, %v2633_v63 }
 0x246   : > { %v2637_v50 = vpop.eup %2636  ;;  %1985 = vst.msk [vmem:[%s3010_s13 + $0x188] sm:$0xff] %vm1935_vm2, %v1920_v23  ;;  %v1925_v34 = vsel %vm1797_vm10, %v2631_v1, %v1861_v55  ;;  %v1674_v39 = vadd.f32 1.0, %v2635_v38 }
 0x247   : > { %1990 = vst.msk [vmem:[%s3010_s13 + $0x1b0] sm:$0xff] %vm1935_vm2, %v1925_v34  ;;  %2654 = vrcp.f32 %v1671_v60  ;;  %v1672_v47 = vadd.f32 1.0, %v2637_v50  ;;  %v2639_v5 = vpop.eup %2638 }
 0x248   : > { %2656 = vrcp.f32 %v1674_v39  ;;  %v1859_v49 = vmul.f32 %v2639_v5, %v3682_v57 }
 0x249   : > { %2658 = vrcp.f32 %v1672_v47 }
 0x24a   : > { %v2641_v61 = vpop.eup %2640  ;;  %v1923_v17 = vsel %vm1795_vm11, %v2639_v5, %v1859_v49 }
 0x24b   : > { %v2643_v58 = vpop.eup %2642  ;;  %v1862_v12 = vmul.f32 %v2641_v61, %v3689_v37  ;;  %1988 = vst.msk [vmem:[%s3010_s13 + $0x1a0] sm:$0xff] %vm1935_vm2, %v1923_v17 }
 0x24c   : > { %v2645_v33 = vpop.eup %2644  ;;  %v1677_v48 = vadd.f32 1.0, %v2643_v58 }
 0x24d   : > { %v2647_v11 = vpop.eup %2646  ;;  %v1926_v4 = vsel %vm1798_vm12, %v2641_v61, %v1862_v12  ;;  %v1860_v31 = vmul.f32 %v2645_v33, %v3698_v6 }
 0x24e   : > { %v2649_v57 = vpop.eup %2648  ;;  %1991 = vst.msk [vmem:[%s3010_s13 + $0x1b8] sm:$0xff] %vm1935_vm2, %v1926_v4  ;;  %2660 = vrcp.f32 %v1677_v48  ;;  %v1675_v25 = vadd.f32 1.0, %v2647_v11 }
 0x24f   : > { %v2651_v13 = vpop.eup %2650  ;;  %v1924_v28 = vsel %vm1796_vm13, %v2645_v33, %v1860_v31  ;;  %v1678_v20 = vadd.f32 1.0, %v2649_v57 }
 0x250   : > { %v2653_v37 = vpop.eup %2652  ;;  %1989 = vst.msk [vmem:[%s3010_s13 + $0x1a8] sm:$0xff] %vm1935_vm2, %v1924_v28  ;;  %2662 = vrcp.f32 %v1675_v25  ;;  %v1676_v9 = vadd.f32 1.0, %v2651_v13 }
 0x251   : > { %v1865_v15 = vmul.f32 %v2653_v37, %v2625_v3  ;;  %2664 = vrcp.f32 %v1678_v20 }
 0x252   : > { %2666 = vrcp.f32 %v1676_v9 }
 0x253   : > { %v1929_v42 = vsel %vm1801_vm14, %v2653_v37, %v1865_v15 }
 0x254   : > { %v2655_v51 = vpop.eup %2654  ;;  %1994 = vst.msk [vmem:[%s3010_s13 + $0x1d0] sm:$0xff] %vm1935_vm2, %v1929_v42 }
 0x255   : > { %v2657_v18 = vpop.eup %2656  ;;  %v1863_v27 = vmul.f32 %v2655_v51, %v2633_v63 }
 0x256   : > { %v2659_v35 = vpop.eup %2658  ;;  %v1866_v32 = vmul.f32 %v2657_v18, %v2635_v38 }
 0x257   : > { %v1927_v45 = vsel %vm1799_vm15, %v2655_v51, %v1863_v27  ;;  %v1864_v6 = vmul.f32 %v2659_v35, %v2637_v50 }
 0x258   : > { %1992 = vst.msk [vmem:[%s3010_s13 + $0x1c0] sm:$0xff] %vm1935_vm2, %v1927_v45  ;;  %v1930_v30 = vsel %vm1802_vm0, %v2657_v18, %v1866_v32 }
 0x259   : > { %1995 = vst.msk [vmem:[%s3010_s13 + $0x1d8] sm:$0xff] %vm1935_vm2, %v1930_v30  ;;  %v1928_v62 = vsel %vm1800_vm1, %v2659_v35, %v1864_v6 }
 0x25a   : > { %1993 = vst.msk [vmem:[%s3010_s13 + $0x1c8] sm:$0xff] %vm1935_vm2, %v1928_v62 }
 0x25b   : > { %v2661_v29 = vpop.eup %2660 }
 0x25c   : > { %v1869_v8 = vmul.f32 %v2661_v29, %v2643_v58 }
 0x25d   : > { %v2663_v2 = vpop.eup %2662 }
 0x25e   : > { %v2665_v22 = vpop.eup %2664  ;;  %v1933_v16 = vsel %vm1805_vm3, %v2661_v29, %v1869_v8  ;;  %v1867_v0 = vmul.f32 %v2663_v2, %v2647_v11 }
 0x25f   : > { %v2667_v41 = vpop.eup %2666  ;;  %1998 = vst.msk [vmem:[%s3010_s13 + $0x1f0] sm:$0xff] %vm1935_vm2, %v1933_v16  ;;  %v1870_v59 = vmul.f32 %v2665_v22, %v2649_v57 }
 0x260   : > { %v1931_v14 = vsel %vm1803_vm4, %v2663_v2, %v1867_v0  ;;  %v1868_v19 = vmul.f32 %v2667_v41, %v2651_v13 }
 0x261   : > { %1996 = vst.msk [vmem:[%s3010_s13 + $0x1e0] sm:$0xff] %vm1935_vm2, %v1931_v14  ;;  %v1934_v26 = vsel %vm1806_vm5, %v2665_v22, %v1870_v59 }
 0x262   : > { %1999 = vst.msk [vmem:[%s3010_s13 + $0x1f8] sm:$0xff] %vm1935_vm2, %v1934_v26  ;;  %v1932_v7 = vsel %vm1804_vm6, %v2667_v41, %v1868_v19 }
 0x263   : > { %1997 = vst.msk [vmem:[%s3010_s13 + $0x1e8] sm:$0xff] %vm1935_vm2, %v1932_v7 }
 0x264 PF: > { %s15_s18 = sadd.s32 1, %s2675_s18  }
 0x265   : > { %p12_p4 = scmp.ge.s32.totalorder %s15_s18, 4  }
 0x267   :  { %14 = sbr.rel (!%p12_p4) target bundleno = 1 (0x1), region = 70 }

</bundles_post_ra>
